<compile_context>
chip_gen: v5e
topology: v5e:2x2
jax: 0.10.0
libtpu: 0.0.40
codegen_flags: <defaults>
</compile_context>

<pallas_src>
import numpy as np
import jax
import jax.numpy as jnp
from jax import lax
from jax.experimental import pallas as pl
from jax.experimental.pallas import tpu as pltpu

# ----------------------------------------------------------------------------
# Constants from MemristorArray.__init__
# ----------------------------------------------------------------------------
LOW_DEGREE = 7          # number of coefficients of the low-resistance polynomial
HIGH_DEGREE = 6         # number of coefficients of the high-resistance polynomial
BW = 1e-08
KBT = 1.380649e-23 * 300.0
NOISE_MIN_VOLTAGE = 1e-12
E_CONST = float(np.exp(1.0))

LANE = 128
_NOISE_CHUNK = 128      # I-chunk size for the in-kernel noise reduction loop


def _round_up(a: int, b: int) -> int:
    return ((a + b - 1) // b) * b


def _noise_chunk(i_dim: int) -> int:
    # Chunk the I axis only when it divides evenly; otherwise fall back to a
    # single full-I pass (correct, just with a larger live 3D set).
    if i_dim > _NOISE_CHUNK and i_dim % _NOISE_CHUNK == 0:
        return _NOISE_CHUNK
    return i_dim


def _tpu_vmem_capacity_bytes() -> int:
    try:
        return int(pltpu.get_tpu_info().vmem_capacity_bytes)
    except Exception:
        return 64 << 20   # conservative (v7x-sized) fallback


# ----------------------------------------------------------------------------
# Pallas kernel
# ----------------------------------------------------------------------------
def _paired_memristor_kernel(
    lo_pos_ref,  # SMEM [LOW_DEGREE]   poly coeffs (ascending degree), pos array
    hi_pos_ref,  # SMEM [HIGH_DEGREE]
    lo_neg_ref,  # SMEM [LOW_DEGREE]
    hi_neg_ref,  # SMEM [HIGH_DEGREE]
    x_ref,       # VMEM [bm, I]
    r_pos_ref,   # VMEM [I, tO]
    r_neg_ref,   # VMEM [I, tO]
    n_pos_ref,   # VMEM [I, tO]  gaussian noise tile (broadcast over batch)
    n_neg_ref,   # VMEM [I, tO]
    out_ref,     # VMEM [bm, tO]
):
    x = x_ref[...].astype(jnp.float32)                      # [bm, I]
    bm, to = out_ref.shape
    i_dim = x.shape[-1]
    chunk = _noise_chunk(i_dim)
    n_chunks = i_dim // chunk

    # Fused, strictly-positive noise scale shared by pos and neg branches:
    #   johnson + shot = |raw| * (4*kBT*BW/(|x|+eps) + 2*e*BW) = |raw| * k
    abs_x = jnp.abs(x) + NOISE_MIN_VOLTAGE                  # [bm, I]
    k = (4.0 * KBT * BW) / abs_x + (2.0 * E_CONST * BW)     # [bm, I] (cheap 2D)

    def poly_eval(coef_ref, n_coef):
        # Horner evaluation of sum_p coef[p] * x**p (ascending coefficients).
        acc = jnp.zeros_like(x) + coef_ref[n_coef - 1]
        for p in range(n_coef - 2, -1, -1):
            acc = acc * x + coef_ref[p]
        return acc                                          # [bm, I]

    def branch(lo_ref, hi_ref, r_ref, n_ref):
        low = poly_eval(lo_ref, LOW_DEGREE)                 # [bm, I]
        high = poly_eval(hi_ref, HIGH_DEGREE)               # [bm, I]
        diff = high - low                                   # [bm, I]

        # Deterministic part of the I-reduction on the MXU:
        #   sum_i raw = sum_i low + (high - low) @ r
        det = jnp.sum(low, axis=-1, keepdims=True) + jnp.dot(
            diff, r_ref[...],
            preferred_element_type=jnp.float32,
            precision=lax.Precision.HIGHEST)                # [bm, tO]

        # Noise part on the VPU/EUP path, k folded in before the sqrt:
        #   sigma = sqrt(|raw| * k) = sqrt(|low*k + (high-low)*k * r|)
        lowk = low * k                                      # [bm, I]
        diffk = diff * k                                    # [bm, I]

        def chunk_term(lk, dk, rc, nc):
            rawk = lk[:, :, None] + dk[:, :, None] * rc[None, :, :]
            return jnp.sum(nc[None, :, :] * jnp.sqrt(jnp.abs(rawk)), axis=-2)

        if n_chunks == 1:
            noise_sum = chunk_term(lowk, diffk, r_ref[...], n_ref[...])
        else:
            # Bound the live 3D set to [bm, chunk, tO] with a fori_loop
            # (a static Python loop would not bound live ranges).
            def body(c, acc):
                s = pl.multiple_of(c * chunk, chunk)
                lk = lax.dynamic_slice_in_dim(lowk, s, chunk, axis=1)
                dk = lax.dynamic_slice_in_dim(diffk, s, chunk, axis=1)
                rc = r_ref[pl.ds(s, chunk), :]
                nc = n_ref[pl.ds(s, chunk), :]
                return acc + chunk_term(lk, dk, rc, nc)

            noise_sum = lax.fori_loop(
                0, n_chunks, body,
                jnp.zeros((bm, to), jnp.float32),
                unroll=n_chunks <= 4)

        return det + noise_sum                              # [bm, tO]

    # pos branch fully reduced to [bm, tO] before the neg branch's 3D
    # temporaries are created (keeps the live 3D set small; matters on v5e/v7x).
    out_pos = branch(lo_pos_ref, hi_pos_ref, r_pos_ref, n_pos_ref)
    out_neg = branch(lo_neg_ref, hi_neg_ref, r_neg_ref, n_neg_ref)
    out_ref[...] = (out_pos - out_neg).astype(out_ref.dtype)


# ----------------------------------------------------------------------------
# Wrapper
# ----------------------------------------------------------------------------
def paired_memristor_forward(
    x,                                 # [B, I] float32
    lo_pos, hi_pos, lo_neg, hi_neg,    # poly coeffs, ascending degree
    r_pos, r_neg,                      # [I, O]
    noise_pos, noise_neg,              # [I, O]  (randn_broadcast trailing tile)
    *,
    bm=None,
    to=None,
):
    B, I = x.shape
    O = r_pos.shape[-1]

    # --- generation-aware VMEM budgets ------------------------------------
    vmem_cap = _tpu_vmem_capacity_bytes()          # 64 MiB v7x, 128 MiB v5e/v6e
    vmem_limit_cap = (vmem_cap // 4) * 3           # ~48 MiB v7x, ~96 MiB v5e/v6e
    budget = int(0.55 * vmem_limit_cap)            # tile-selection budget

    chunk = _noise_chunk(I)

    def footprint(bm_c, to_c):
        # double-buffered block tiles (x, out, 4x r/noise) ...
        blocks = 4 * (2 * bm_c * I + 2 * bm_c * to_c + 2 * 4 * I * to_c)
        # ... plus live chunked 3D temporaries and 2D values
        work = 4 * (3 * bm_c * chunk * to_c + 8 * bm_c * I)
        return blocks + work

    # --- lane-dense O: pad to a multiple of 128; padded (zero) columns produce
    #     garbage that is simply sliced off (outputs are column-independent).
    O_pad128 = _round_up(O, LANE)
    if to is None:
        to = LANE
        # prefer bm >= 64 before growing tO past 128/256 (joint budget check)
        for cand in (512, 256, 128):
            if O_pad128 % cand == 0 and footprint(64, cand) <= budget:
                to = cand
                break
    O_pad = _round_up(O_pad128, to)
    if O_pad != O:
        padO = ((0, 0), (0, O_pad - O))
        r_pos = jnp.pad(r_pos, padO)
        r_neg = jnp.pad(r_neg, padO)
        noise_pos = jnp.pad(noise_pos, padO)
        noise_neg = jnp.pad(noise_neg, padO)
    n_o = O_pad // to

    # --- batch tile: multiple of 8, picked jointly with tO from the budget.
    if bm is None:
        bm = 8
        bmax = min(256, _round_up(B, 8))
        for cand in (256, 128, 64, 32, 16, 8):
            if cand <= bmax and footprint(cand, to) <= budget:
                bm = cand
                break
        # If megacore cannot split along O, make sure batch has >= 2 grid steps
        # (pipelining + both TensorCores).
        if n_o == 1 and B > 8 and _round_up(B, bm) // bm < 2:
            bm = max(8, (_round_up(B, 16) // 2) // 8 * 8)
    B_pad = _round_up(B, bm)
    if B_pad != B:
        x = jnp.pad(x, ((0, B_pad - B), (0, 0)))   # padded rows sliced off
    n_b = B_pad // bm

    # Scoped-VMEM limit from the actual tile footprint, clamped to physical VMEM.
    need = footprint(bm, to)
    vmem_limit = int(min(vmem_limit_cap, max(32 << 20, int(1.5 * need))))

    # Megacore split: along O when possible (preserves r/noise tile reuse on the
    # inner batch axis); otherwise along batch.
    if n_o >= 2:
        dim_sem = ("parallel", "arbitrary")
    else:
        dim_sem = ("arbitrary", "parallel")

    # Advisory cost estimate for XLA's scheduler.
    cost = pl.CostEstimate(
        flops=int(2 * 7 * B_pad * I * O_pad),
        transcendentals=int(2 * B_pad * I * O_pad),
        bytes_accessed=int(4 * (B_pad * I * n_o + 4 * I * O_pad + B_pad * O_pad)),
    )

    smem_spec = pl.BlockSpec(memory_space=pltpu.MemorySpace.SMEM)
    io_spec = pl.BlockSpec((I, to), lambda o, b: (0, o))   # constant over inner b

    out = pl.pallas_call(
        _paired_memristor_kernel,
        out_shape=jax.ShapeDtypeStruct((B_pad, O_pad), jnp.float32),
        grid=(n_o, n_b),                                   # batch innermost
        in_specs=[
            smem_spec, smem_spec, smem_spec, smem_spec,    # poly coeffs
            pl.BlockSpec((bm, I), lambda o, b: (b, 0)),    # x
            io_spec, io_spec,                              # r_pos, r_neg
            io_spec, io_spec,                              # noise tiles
        ],
        out_specs=pl.BlockSpec((bm, to), lambda o, b: (b, o)),
        compiler_params=pltpu.CompilerParams(
            dimension_semantics=dim_sem,
            vmem_limit_bytes=vmem_limit,
        ),
        cost_estimate=cost,
    )(lo_pos, hi_pos, lo_neg, hi_neg, x, r_pos, r_neg, noise_pos, noise_neg)

    return out[:B, :O]


# ----------------------------------------------------------------------------
# Pure-JAX reference (mirrors the PyTorch forward exactly)
# ----------------------------------------------------------------------------
def _ref_single(inputs, lo, hi, r, noise_tile):
    exps_lo = jnp.arange(lo.shape[0], dtype=jnp.float32)
    exps_hi = jnp.arange(hi.shape[0], dtype=jnp.float32)
    low = jnp.sum(lo * inputs[..., None] ** exps_lo, axis=-1)[..., None]
    high = jnp.sum(hi * inputs[..., None] ** exps_hi, axis=-1)[..., None]
    raw = low * (1.0 - r) + high * r
    johnson = 4.0 * KBT * BW * jnp.abs(
        raw / (jnp.abs(inputs[..., None]) + NOISE_MIN_VOLTAGE)
    )
    shot = 2.0 * E_CONST * jnp.abs(raw) * BW
    sigma = jnp.sqrt(johnson + shot)
    noised = raw + noise_tile[None, :, :] * sigma
    return jnp.sum(noised, axis=-2)


def _ref_paired(x, lo_p, hi_p, lo_n, hi_n, r_p, r_n, n_p, n_n):
    return _ref_single(x, lo_p, hi_p, r_p, n_p) - _ref_single(x, lo_n, hi_n, r_n, n_n)


# ----------------------------------------------------------------------------
# Main
# ----------------------------------------------------------------------------
if __name__ == "__main__":
    B, I, O = 16, 16, 32   # small shapes consistent with [...B, I] -> [...B, O]

    key = jax.random.PRNGKey(0)
    keys = jax.random.split(key, 8)

    # Deterministic synthetic parameters (the torch module fills them from a
    # CellArray; here we draw small random polynomial coeffs and resistance
    # state fractions r in [0, 1]).
    lo_pos = jax.random.normal(keys[0], (LOW_DEGREE,), jnp.float32) * 0.1
    hi_pos = jax.random.normal(keys[1], (HIGH_DEGREE,), jnp.float32) * 0.1
    lo_neg = jax.random.normal(keys[2], (LOW_DEGREE,), jnp.float32) * 0.1
    hi_neg = jax.random.normal(keys[3], (HIGH_DEGREE,), jnp.float32) * 0.1
    r_pos = jax.random.uniform(keys[4], (I, O), jnp.float32)
    r_neg = jax.random.uniform(keys[5], (I, O), jnp.float32)

    # Inputs and the broadcast noise tiles (randn_broadcast, broadcast_noise_dims=1)
    x = jax.random.normal(keys[6], (B, I), jnp.float32)
    nkey_p, nkey_n = jax.random.split(keys[7])
    noise_pos = jax.random.normal(nkey_p, (I, O), jnp.float32)
    noise_neg = jax.random.normal(nkey_n, (I, O), jnp.float32)

    out = paired_memristor_forward(
        x, lo_pos, hi_pos, lo_neg, hi_neg, r_pos, r_neg, noise_pos, noise_neg
    )
    out = jax.block_until_ready(out)

    ref = _ref_paired(x, lo_pos, hi_pos, lo_neg, hi_neg, r_pos, r_neg,
                      noise_pos, noise_neg)
    # Slightly relaxed rtol vs the torch-exact form: the MXU dot and the fused
    # sigma reassociate the I-reduction (mathematically identical, fp-reordered).
    np.testing.assert_allclose(np.asarray(out), np.asarray(ref),
                               rtol=1e-4, atol=1e-5)

    assert out.shape == (B, O) and out.dtype == jnp.float32
    print("KERNEL_OK")
</pallas_src>

<mosaic_0001>
module attributes {stable_mosaic.version = 11 : i64} {
  func.func @_paired_memristor_kernel(%arg0: i32, %arg1: i32, %arg2: memref<7xf32, #tpu.memory_space<smem>>, %arg3: memref<6xf32, #tpu.memory_space<smem>>, %arg4: memref<7xf32, #tpu.memory_space<smem>>, %arg5: memref<6xf32, #tpu.memory_space<smem>>, %arg6: memref<8x16xf32, #tpu.memory_space<vmem>>, %arg7: memref<16x128xf32, #tpu.memory_space<vmem>>, %arg8: memref<16x128xf32, #tpu.memory_space<vmem>>, %arg9: memref<16x128xf32, #tpu.memory_space<vmem>>, %arg10: memref<16x128xf32, #tpu.memory_space<vmem>>, %arg11: memref<8x128xf32, #tpu.memory_space<vmem>>) attributes {dimension_semantics = [#tpu.dimension_semantics<arbitrary>, #tpu.dimension_semantics<parallel>], iteration_bounds = array<i64: 1, 2>, scalar_prefetch = 0 : i64, scratch_operands = 0 : i64, tpu.core_type = #tpu.core_type<tc>, window_params = [{transform_indices = @transform_0, window_bounds = array<i64: 7>}, {transform_indices = @transform_1, window_bounds = array<i64: 6>}, {transform_indices = @transform_2, window_bounds = array<i64: 7>}, {transform_indices = @transform_3, window_bounds = array<i64: 6>}, {transform_indices = @transform_4, window_bounds = array<i64: 8, 16>}, {transform_indices = @transform_5, window_bounds = array<i64: 16, 128>}, {transform_indices = @transform_6, window_bounds = array<i64: 16, 128>}, {transform_indices = @transform_7, window_bounds = array<i64: 16, 128>}, {transform_indices = @transform_8, window_bounds = array<i64: 16, 128>}, {transform_indices = @transform_9, window_bounds = array<i64: 8, 128>}]} {
    %c0 = arith.constant 0 : index
    %c0_0 = arith.constant 0 : index
    %0 = vector.load %arg6[%c0, %c0_0] : memref<8x16xf32, #tpu.memory_space<vmem>>, vector<8x16xf32>
    %1 = math.absf %0 : vector<8x16xf32>
    %cst = arith.constant 9.99999996E-13 : f32
    %2 = vector.broadcast %cst : f32 to vector<8x16xf32>
    %3 = arith.addf %1, %2 : vector<8x16xf32>
    %cst_1 = arith.constant 1.65677883E-28 : f32
    %4 = vector.broadcast %cst_1 : f32 to vector<8x16xf32>
    %5 = arith.divf %4, %3 : vector<8x16xf32>
    %cst_2 = arith.constant 5.43656355E-8 : f32
    %6 = vector.broadcast %cst_2 : f32 to vector<8x16xf32>
    %7 = arith.addf %5, %6 : vector<8x16xf32>
    %cst_3 = arith.constant 0.000000e+00 : f32
    %8 = vector.broadcast %cst_3 : f32 to vector<8x16xf32>
    %c6 = arith.constant 6 : index
    %9 = memref.load %arg2[%c6] : memref<7xf32, #tpu.memory_space<smem>>
    %10 = vector.broadcast %9 : f32 to vector<8x16xf32>
    %11 = arith.addf %8, %10 : vector<8x16xf32>
    %12 = arith.mulf %11, %0 : vector<8x16xf32>
    %c5 = arith.constant 5 : index
    %13 = memref.load %arg2[%c5] : memref<7xf32, #tpu.memory_space<smem>>
    %14 = vector.broadcast %13 : f32 to vector<8x16xf32>
    %15 = arith.addf %12, %14 : vector<8x16xf32>
    %16 = arith.mulf %15, %0 : vector<8x16xf32>
    %c4 = arith.constant 4 : index
    %17 = memref.load %arg2[%c4] : memref<7xf32, #tpu.memory_space<smem>>
    %18 = vector.broadcast %17 : f32 to vector<8x16xf32>
    %19 = arith.addf %16, %18 : vector<8x16xf32>
    %20 = arith.mulf %19, %0 : vector<8x16xf32>
    %c3 = arith.constant 3 : index
    %21 = memref.load %arg2[%c3] : memref<7xf32, #tpu.memory_space<smem>>
    %22 = vector.broadcast %21 : f32 to vector<8x16xf32>
    %23 = arith.addf %20, %22 : vector<8x16xf32>
    %24 = arith.mulf %23, %0 : vector<8x16xf32>
    %c2 = arith.constant 2 : index
    %25 = memref.load %arg2[%c2] : memref<7xf32, #tpu.memory_space<smem>>
    %26 = vector.broadcast %25 : f32 to vector<8x16xf32>
    %27 = arith.addf %24, %26 : vector<8x16xf32>
    %28 = arith.mulf %27, %0 : vector<8x16xf32>
    %c1 = arith.constant 1 : index
    %29 = memref.load %arg2[%c1] : memref<7xf32, #tpu.memory_space<smem>>
    %30 = vector.broadcast %29 : f32 to vector<8x16xf32>
    %31 = arith.addf %28, %30 : vector<8x16xf32>
    %32 = arith.mulf %31, %0 : vector<8x16xf32>
    %c0_4 = arith.constant 0 : index
    %33 = memref.load %arg2[%c0_4] : memref<7xf32, #tpu.memory_space<smem>>
    %34 = vector.broadcast %33 : f32 to vector<8x16xf32>
    %35 = arith.addf %32, %34 : vector<8x16xf32>
    %cst_5 = arith.constant 0.000000e+00 : f32
    %36 = vector.broadcast %cst_5 : f32 to vector<8x16xf32>
    %c5_6 = arith.constant 5 : index
    %37 = memref.load %arg3[%c5_6] : memref<6xf32, #tpu.memory_space<smem>>
    %38 = vector.broadcast %37 : f32 to vector<8x16xf32>
    %39 = arith.addf %36, %38 : vector<8x16xf32>
    %40 = arith.mulf %39, %0 : vector<8x16xf32>
    %c4_7 = arith.constant 4 : index
    %41 = memref.load %arg3[%c4_7] : memref<6xf32, #tpu.memory_space<smem>>
    %42 = vector.broadcast %41 : f32 to vector<8x16xf32>
    %43 = arith.addf %40, %42 : vector<8x16xf32>
    %44 = arith.mulf %43, %0 : vector<8x16xf32>
    %c3_8 = arith.constant 3 : index
    %45 = memref.load %arg3[%c3_8] : memref<6xf32, #tpu.memory_space<smem>>
    %46 = vector.broadcast %45 : f32 to vector<8x16xf32>
    %47 = arith.addf %44, %46 : vector<8x16xf32>
    %48 = arith.mulf %47, %0 : vector<8x16xf32>
    %c2_9 = arith.constant 2 : index
    %49 = memref.load %arg3[%c2_9] : memref<6xf32, #tpu.memory_space<smem>>
    %50 = vector.broadcast %49 : f32 to vector<8x16xf32>
    %51 = arith.addf %48, %50 : vector<8x16xf32>
    %52 = arith.mulf %51, %0 : vector<8x16xf32>
    %c1_10 = arith.constant 1 : index
    %53 = memref.load %arg3[%c1_10] : memref<6xf32, #tpu.memory_space<smem>>
    %54 = vector.broadcast %53 : f32 to vector<8x16xf32>
    %55 = arith.addf %52, %54 : vector<8x16xf32>
    %56 = arith.mulf %55, %0 : vector<8x16xf32>
    %c0_11 = arith.constant 0 : index
    %57 = memref.load %arg3[%c0_11] : memref<6xf32, #tpu.memory_space<smem>>
    %58 = vector.broadcast %57 : f32 to vector<8x16xf32>
    %59 = arith.addf %56, %58 : vector<8x16xf32>
    %60 = arith.subf %59, %35 : vector<8x16xf32>
    %cst_12 = arith.constant dense<0.000000e+00> : vector<8xf32>
    %61 = vector.multi_reduction <add>, %35, %cst_12 [1] : vector<8x16xf32> to vector<8xf32>
    %62 = vector.shape_cast %61 : vector<8xf32> to vector<8x1xf32>
    %c0_13 = arith.constant 0 : index
    %c0_14 = arith.constant 0 : index
    %63 = vector.load %arg7[%c0_13, %c0_14] : memref<16x128xf32, #tpu.memory_space<vmem>>, vector<16x128xf32>
    %cst_15 = arith.constant dense<0.000000e+00> : vector<8x128xf32>
    %64 = tpu.matmul %60, %63, %cst_15 {dimension_numbers = #tpu.dot_dimension_numbers<[1], [0], [0], [1], [0, 0, 1, 1], [], []>, precision = #tpu.contract_precision<fp32>} : vector<8x16xf32>, vector<16x128xf32>, vector<8x128xf32> -> vector<8x128xf32>
    %65 = vector.broadcast %62 : vector<8x1xf32> to vector<8x128xf32>
    %66 = arith.addf %65, %64 : vector<8x128xf32>
    %67 = arith.mulf %35, %7 : vector<8x16xf32>
    %68 = arith.mulf %60, %7 : vector<8x16xf32>
    %c0_16 = arith.constant 0 : index
    %c0_17 = arith.constant 0 : index
    %69 = vector.load %arg7[%c0_16, %c0_17] : memref<16x128xf32, #tpu.memory_space<vmem>>, vector<16x128xf32>
    %c0_18 = arith.constant 0 : index
    %c0_19 = arith.constant 0 : index
    %70 = vector.load %arg9[%c0_18, %c0_19] : memref<16x128xf32, #tpu.memory_space<vmem>>, vector<16x128xf32>
    %71 = vector.shape_cast %67 : vector<8x16xf32> to vector<8x16x1xf32>
    %72 = vector.shape_cast %68 : vector<8x16xf32> to vector<8x16x1xf32>
    %73 = vector.shape_cast %69 : vector<16x128xf32> to vector<1x16x128xf32>
    %74 = vector.broadcast %72 : vector<8x16x1xf32> to vector<8x16x128xf32>
    %75 = vector.broadcast %73 : vector<1x16x128xf32> to vector<8x16x128xf32>
    %76 = arith.mulf %74, %75 : vector<8x16x128xf32>
    %77 = vector.broadcast %71 : vector<8x16x1xf32> to vector<8x16x128xf32>
    %78 = arith.addf %77, %76 : vector<8x16x128xf32>
    %79 = vector.shape_cast %70 : vector<16x128xf32> to vector<1x16x128xf32>
    %80 = math.absf %78 : vector<8x16x128xf32>
    %81 = math.sqrt %80 : vector<8x16x128xf32>
    %82 = vector.broadcast %79 : vector<1x16x128xf32> to vector<8x16x128xf32>
    %83 = arith.mulf %82, %81 : vector<8x16x128xf32>
    %cst_20 = arith.constant dense<0.000000e+00> : vector<8x128xf32>
    %84 = vector.multi_reduction <add>, %83, %cst_20 [1] : vector<8x16x128xf32> to vector<8x128xf32>
    %85 = arith.addf %66, %84 : vector<8x128xf32>
    %cst_21 = arith.constant 0.000000e+00 : f32
    %86 = vector.broadcast %cst_21 : f32 to vector<8x16xf32>
    %c6_22 = arith.constant 6 : index
    %87 = memref.load %arg4[%c6_22] : memref<7xf32, #tpu.memory_space<smem>>
    %88 = vector.broadcast %87 : f32 to vector<8x16xf32>
    %89 = arith.addf %86, %88 : vector<8x16xf32>
    %90 = arith.mulf %89, %0 : vector<8x16xf32>
    %c5_23 = arith.constant 5 : index
    %91 = memref.load %arg4[%c5_23] : memref<7xf32, #tpu.memory_space<smem>>
    %92 = vector.broadcast %91 : f32 to vector<8x16xf32>
    %93 = arith.addf %90, %92 : vector<8x16xf32>
    %94 = arith.mulf %93, %0 : vector<8x16xf32>
    %c4_24 = arith.constant 4 : index
    %95 = memref.load %arg4[%c4_24] : memref<7xf32, #tpu.memory_space<smem>>
    %96 = vector.broadcast %95 : f32 to vector<8x16xf32>
    %97 = arith.addf %94, %96 : vector<8x16xf32>
    %98 = arith.mulf %97, %0 : vector<8x16xf32>
    %c3_25 = arith.constant 3 : index
    %99 = memref.load %arg4[%c3_25] : memref<7xf32, #tpu.memory_space<smem>>
    %100 = vector.broadcast %99 : f32 to vector<8x16xf32>
    %101 = arith.addf %98, %100 : vector<8x16xf32>
    %102 = arith.mulf %101, %0 : vector<8x16xf32>
    %c2_26 = arith.constant 2 : index
    %103 = memref.load %arg4[%c2_26] : memref<7xf32, #tpu.memory_space<smem>>
    %104 = vector.broadcast %103 : f32 to vector<8x16xf32>
    %105 = arith.addf %102, %104 : vector<8x16xf32>
    %106 = arith.mulf %105, %0 : vector<8x16xf32>
    %c1_27 = arith.constant 1 : index
    %107 = memref.load %arg4[%c1_27] : memref<7xf32, #tpu.memory_space<smem>>
    %108 = vector.broadcast %107 : f32 to vector<8x16xf32>
    %109 = arith.addf %106, %108 : vector<8x16xf32>
    %110 = arith.mulf %109, %0 : vector<8x16xf32>
    %c0_28 = arith.constant 0 : index
    %111 = memref.load %arg4[%c0_28] : memref<7xf32, #tpu.memory_space<smem>>
    %112 = vector.broadcast %111 : f32 to vector<8x16xf32>
    %113 = arith.addf %110, %112 : vector<8x16xf32>
    %cst_29 = arith.constant 0.000000e+00 : f32
    %114 = vector.broadcast %cst_29 : f32 to vector<8x16xf32>
    %c5_30 = arith.constant 5 : index
    %115 = memref.load %arg5[%c5_30] : memref<6xf32, #tpu.memory_space<smem>>
    %116 = vector.broadcast %115 : f32 to vector<8x16xf32>
    %117 = arith.addf %114, %116 : vector<8x16xf32>
    %118 = arith.mulf %117, %0 : vector<8x16xf32>
    %c4_31 = arith.constant 4 : index
    %119 = memref.load %arg5[%c4_31] : memref<6xf32, #tpu.memory_space<smem>>
    %120 = vector.broadcast %119 : f32 to vector<8x16xf32>
    %121 = arith.addf %118, %120 : vector<8x16xf32>
    %122 = arith.mulf %121, %0 : vector<8x16xf32>
    %c3_32 = arith.constant 3 : index
    %123 = memref.load %arg5[%c3_32] : memref<6xf32, #tpu.memory_space<smem>>
    %124 = vector.broadcast %123 : f32 to vector<8x16xf32>
    %125 = arith.addf %122, %124 : vector<8x16xf32>
    %126 = arith.mulf %125, %0 : vector<8x16xf32>
    %c2_33 = arith.constant 2 : index
    %127 = memref.load %arg5[%c2_33] : memref<6xf32, #tpu.memory_space<smem>>
    %128 = vector.broadcast %127 : f32 to vector<8x16xf32>
    %129 = arith.addf %126, %128 : vector<8x16xf32>
    %130 = arith.mulf %129, %0 : vector<8x16xf32>
    %c1_34 = arith.constant 1 : index
    %131 = memref.load %arg5[%c1_34] : memref<6xf32, #tpu.memory_space<smem>>
    %132 = vector.broadcast %131 : f32 to vector<8x16xf32>
    %133 = arith.addf %130, %132 : vector<8x16xf32>
    %134 = arith.mulf %133, %0 : vector<8x16xf32>
    %c0_35 = arith.constant 0 : index
    %135 = memref.load %arg5[%c0_35] : memref<6xf32, #tpu.memory_space<smem>>
    %136 = vector.broadcast %135 : f32 to vector<8x16xf32>
    %137 = arith.addf %134, %136 : vector<8x16xf32>
    %138 = arith.subf %137, %113 : vector<8x16xf32>
    %cst_36 = arith.constant dense<0.000000e+00> : vector<8xf32>
    %139 = vector.multi_reduction <add>, %113, %cst_36 [1] : vector<8x16xf32> to vector<8xf32>
    %140 = vector.shape_cast %139 : vector<8xf32> to vector<8x1xf32>
    %c0_37 = arith.constant 0 : index
    %c0_38 = arith.constant 0 : index
    %141 = vector.load %arg8[%c0_37, %c0_38] : memref<16x128xf32, #tpu.memory_space<vmem>>, vector<16x128xf32>
    %cst_39 = arith.constant dense<0.000000e+00> : vector<8x128xf32>
    %142 = tpu.matmul %138, %141, %cst_39 {dimension_numbers = #tpu.dot_dimension_numbers<[1], [0], [0], [1], [0, 0, 1, 1], [], []>, precision = #tpu.contract_precision<fp32>} : vector<8x16xf32>, vector<16x128xf32>, vector<8x128xf32> -> vector<8x128xf32>
    %143 = vector.broadcast %140 : vector<8x1xf32> to vector<8x128xf32>
    %144 = arith.addf %143, %142 : vector<8x128xf32>
    %145 = arith.mulf %113, %7 : vector<8x16xf32>
    %146 = arith.mulf %138, %7 : vector<8x16xf32>
    %c0_40 = arith.constant 0 : index
    %c0_41 = arith.constant 0 : index
    %147 = vector.load %arg8[%c0_40, %c0_41] : memref<16x128xf32, #tpu.memory_space<vmem>>, vector<16x128xf32>
    %c0_42 = arith.constant 0 : index
    %c0_43 = arith.constant 0 : index
    %148 = vector.load %arg10[%c0_42, %c0_43] : memref<16x128xf32, #tpu.memory_space<vmem>>, vector<16x128xf32>
    %149 = vector.shape_cast %145 : vector<8x16xf32> to vector<8x16x1xf32>
    %150 = vector.shape_cast %146 : vector<8x16xf32> to vector<8x16x1xf32>
    %151 = vector.shape_cast %147 : vector<16x128xf32> to vector<1x16x128xf32>
    %152 = vector.broadcast %150 : vector<8x16x1xf32> to vector<8x16x128xf32>
    %153 = vector.broadcast %151 : vector<1x16x128xf32> to vector<8x16x128xf32>
    %154 = arith.mulf %152, %153 : vector<8x16x128xf32>
    %155 = vector.broadcast %149 : vector<8x16x1xf32> to vector<8x16x128xf32>
    %156 = arith.addf %155, %154 : vector<8x16x128xf32>
    %157 = vector.shape_cast %148 : vector<16x128xf32> to vector<1x16x128xf32>
    %158 = math.absf %156 : vector<8x16x128xf32>
    %159 = math.sqrt %158 : vector<8x16x128xf32>
    %160 = vector.broadcast %157 : vector<1x16x128xf32> to vector<8x16x128xf32>
    %161 = arith.mulf %160, %159 : vector<8x16x128xf32>
    %cst_44 = arith.constant dense<0.000000e+00> : vector<8x128xf32>
    %162 = vector.multi_reduction <add>, %161, %cst_44 [1] : vector<8x16x128xf32> to vector<8x128xf32>
    %163 = arith.addf %144, %162 : vector<8x128xf32>
    %164 = arith.subf %85, %163 : vector<8x128xf32>
    %c0_45 = arith.constant 0 : index
    %c0_46 = arith.constant 0 : index
    %165 = vector.load %arg11[%c0_45, %c0_46] : memref<8x128xf32, #tpu.memory_space<vmem>>, vector<8x128xf32>
    tpu.vector_store %arg11[%c0_45, %c0_46], %164 {strides = array<i32>} : memref<8x128xf32, #tpu.memory_space<vmem>>, vector<8x128xf32>,
    return
  }
  func.func @transform_0(%arg0: i32, %arg1: i32) -> i32 {
    %c0_i32 = arith.constant 0 : i32
    %c0_i32_0 = arith.constant 0 : i32
    return %c0_i32 : i32
  }
  func.func @transform_1(%arg0: i32, %arg1: i32) -> i32 {
    %c0_i32 = arith.constant 0 : i32
    %c0_i32_0 = arith.constant 0 : i32
    return %c0_i32 : i32
  }
  func.func @transform_2(%arg0: i32, %arg1: i32) -> i32 {
    %c0_i32 = arith.constant 0 : i32
    %c0_i32_0 = arith.constant 0 : i32
    return %c0_i32 : i32
  }
  func.func @transform_3(%arg0: i32, %arg1: i32) -> i32 {
    %c0_i32 = arith.constant 0 : i32
    %c0_i32_0 = arith.constant 0 : i32
    return %c0_i32 : i32
  }
  func.func @transform_4(%arg0: i32, %arg1: i32) -> (i32, i32) {
    %c0_i32 = arith.constant 0 : i32
    %c0_i32_0 = arith.constant 0 : i32
    return %arg1, %c0_i32 : i32, i32
  }
  func.func @transform_5(%arg0: i32, %arg1: i32) -> (i32, i32) {
    %c0_i32 = arith.constant 0 : i32
    %c0_i32_0 = arith.constant 0 : i32
    return %c0_i32, %arg0 : i32, i32
  }
  func.func @transform_6(%arg0: i32, %arg1: i32) -> (i32, i32) {
    %c0_i32 = arith.constant 0 : i32
    %c0_i32_0 = arith.constant 0 : i32
    return %c0_i32, %arg0 : i32, i32
  }
  func.func @transform_7(%arg0: i32, %arg1: i32) -> (i32, i32) {
    %c0_i32 = arith.constant 0 : i32
    %c0_i32_0 = arith.constant 0 : i32
    return %c0_i32, %arg0 : i32, i32
  }
  func.func @transform_8(%arg0: i32, %arg1: i32) -> (i32, i32) {
    %c0_i32 = arith.constant 0 : i32
    %c0_i32_0 = arith.constant 0 : i32
    return %c0_i32, %arg0 : i32, i32
  }
  func.func @transform_9(%arg0: i32, %arg1: i32) -> (i32, i32) {
    %c0_i32 = arith.constant 0 : i32
    return %arg1, %arg0 : i32, i32
  }
}

</mosaic_0001>

<bundles_post_ra>
// kernel: tpu_custom_call.1
= control target key start
LH: loop header
LB: loop body
LE: loop exit
PB: predicated region body
PF: predicated region fallthrough
CT: control target
= control target key end

     0   :  { %s3952_s0 = inlined_call_operand.hbm [shape: f32[7], index: 0, kind: input, shape index: {}]   ;;  %s3953_s1 = inlined_call_operand.hbm [shape: f32[6], index: 1, kind: input, shape index: {}]   ;;  %s3954_s2 = inlined_call_operand.vmem [shape: f32[7], index: 2, kind: input, shape index: {}]   ;;  %s3955_s3 = inlined_call_operand.vmem [shape: f32[6], index: 3, kind: input, shape index: {}]   ;;  %s3956_s4 = inlined_call_operand.hbm [shape: f32[16,16], index: 4, kind: input, shape index: {}]   ;;  %s3957_s5 = inlined_call_operand.hbm [shape: f32[16,128], index: 5, kind: input, shape index: {}]   ;;  %s3958_s6 = inlined_call_operand.hbm [shape: f32[16,128], index: 6, kind: input, shape index: {}]   ;;  %s3959_s7 = inlined_call_operand.hbm [shape: f32[16,128], index: 7, kind: input, shape index: {}]   ;;  %s3960_s8 = inlined_call_operand.hbm [shape: f32[16,128], index: 8, kind: input, shape index: {}]   ;;  %s3961_s9 = inlined_call_operand.hbm [shape: f32[16,128], index: 9, kind: output, shape index: {}]  }
   0x1   :  { %3967 = sst [smem:[#allocation28_spill]] %s3952_s0 }
   0x2   :  { %3968 = sst [smem:[#allocation29_spill]] %s3953_s1 }
   0x3   :  { %3969 = sst [smem:[#allocation30_spill]] %s3957_s5 }
   0x4   :  { %14 = vsyncpa [#allocation5], 0 }
   0x5   :  { %15 = vsyncpa [#allocation8], 0 }
   0x6   :  { %16 = vsyncpa [#allocation6], 0 }
   0x7   :  { %17 = vsyncpa [#allocation11], 0 }
   0x8   :  { %18 = vsyncpa [#allocation3], 0 }
   0x9   :  { %20 = vsyncpa [#allocation3 + $0x1], 0 }
   0xa   :  { %21 = vsyncpa [#allocation14], 0 }
   0xb   :  { %22 = vsyncpa [#allocation17], 0 }
   0xc   :  { %23 = vsyncpa [#allocation4], 0 }
   0xd   :  { %25 = vsyncpa [#allocation4 + $0x1], 0  ;;  %s2907_s30 = smov 0   ;;  %s2909_s10 = smov 0  }
   0xe   :  { %s2911_s11 = smov 0   ;;  %s2913_s12 = smov 0  }
   0xf   :  { %s2915_s13 = smov 0   ;;  %s2917_s14 = smov 0  }
  0x10 LB: > { %s3970_s5 = sld [smem:[#allocation30_spill]]  ;;  %s3962_s18 = sadd.s32 4294967295, %s2845_s14   ;;  %s2845_s14 = sphi %s2917_s14, %s31_s14   ;;  %s2841_s13 = sphi %s2915_s13, %s3988_s13   ;;  %s2837_s12 = sphi %s2913_s12, %s3987_s12   ;;  %s2833_s11 = sphi %s2911_s11, %s3986_s11   ;;  %s2829_s10 = sphi %s2909_s10, %s3985_s10   ;;  %s2825_s30 = sphi %s2907_s30, %s3984_s30  }
  0x11   : > { %p2248_p0 = scmp.ge.s32.totalorder %s2845_s14, 1  ;;  %p2944_p1 = scmp.eq.s32.totalorder %s3962_s18, 0 }
  0x12   : > { %p290_p2 = scmp.lt.s32.totalorder %s2845_s14, 3  ;;  %s2847_s21 = smov [#allocation13]  }
  0x13   : > { %s345_s22 = sshll.u32 %s2847_s21, 4  ;;  %p2257_p5 = scmp.ge.s32.totalorder %s2845_s14, 2  ;;  %s346_s22 = int_to_ptr.vmem [resolvable:$true] %s345_s22 }
  0x14   : > { %p2949_p3 = pnand %p2248_p0, %p290_p2  ;;  %s375_s25 = sshll.u32 %s3959_s7, 4  ;;  %s376_s25 = int_to_ptr.hbm [resolvable:$true] %s375_s25 }
  0x15   : > { %s2848_s27 = smov [#allocation16]   ;;  %s3963_s29 = smov 128  }
  0x16   : > { %s343_s17 = sshll.u32 %s3970_s5, 4  ;;  %p2333_p4 = pneg %p2949_p3  ;;  %s344_s17 = int_to_ptr.hbm [resolvable:$true] %s343_s17 }
  0x17   : > { %s377_s28 = sshll.u32 %s2848_s27, 4  ;;  %s3965_s15 = smov 8   ;;  %s378_s28 = int_to_ptr.vmem [resolvable:$true] %s377_s28 }
  0x18   : > { %p2961_p6 = pnand %p2333_p4, %p2944_p1  ;;  %s3974_s0 = sld [smem:[#allocation28_spill]] }
  0x19   : > { %s3975_s1 = sld [smem:[#allocation29_spill]]  ;;  %s2851_s5 = smov [#allocation2]  }
  0x1a   : > { %2348 = dma.hbm_to_vmem [thread:$0]  (!%p2961_p6), %s344_s17, 256, %s346_s22, [#allocation14], %s3963_s29, %s3963_s29, %s3965_s15  }
  0x1b   : > { %2354 = dma.hbm_to_vmem [thread:$0]  (!%p2961_p6), %s376_s25, 256, %s378_s28, [#allocation17], %s3963_s29, %s3963_s29, %s3965_s15  }
  0x1c   : > { %s2852_s17 = smov [#allocation7]   ;;  %s322_s28 = sshll.u32 %s3954_s2, 4  ;;  %s323_s28 = int_to_ptr.vmem [resolvable:$true] %s322_s28 }
  0x1d   : > { %s332_s29 = sshll.u32 %s3955_s3, 4  ;;  %s2853_s15 = smov [#allocation9]   ;;  %s333_s29 = int_to_ptr.vmem [resolvable:$true] %s332_s29 }
  0x1e   : > { %s302_s23 = sshll.u32 %s3974_s0, 4  ;;  %s359_s24 = sshll.u32 %s3958_s6, 4  ;;  %s303_s23 = int_to_ptr.hbm [resolvable:$true] %s302_s23  ;;  %s360_s24 = int_to_ptr.hbm [resolvable:$true] %s359_s24 }
  0x1f   : > { %s312_s18 = sshll.u32 %s3975_s1, 4  ;;  %s2855_s27 = smov [#allocation15]   ;;  %s313_s18 = int_to_ptr.hbm [resolvable:$true] %s312_s18 }
  0x20   : > { %2336 = dma.hbm_to_smem (!%p2961_p6), %s303_s23, 16, %s2851_s5, [#allocation5]  }
  0x21   : > { %2339 = dma.hbm_to_smem (!%p2961_p6), %s313_s18, 16, %s2852_s17, [#allocation8]  }
  0x22   : > { %2342 = dma.vmem_to_smem (!%p2961_p6), %s323_s28, 16, %s2853_s15, [#allocation6]  }
  0x23   : > { %s2854_s5 = smov [#allocation10]   ;;  %s361_s17 = sshll.u32 %s2855_s27, 4  ;;  %s362_s17 = int_to_ptr.vmem [resolvable:$true] %s361_s17 }
  0x24   : > { %2345 = dma.vmem_to_smem (!%p2961_p6), %s333_s29, 16, %s2854_s5, [#allocation11]  }
  0x25   : > { %s391_s25 = sshll.u32 %s3960_s8, 4  ;;  %s3976_s29 = smov 8   ;;  %s392_s25 = int_to_ptr.hbm [resolvable:$true] %s391_s25 }
  0x26   : > { %s3977_s28 = smov 128   ;;  %s2856_s16 = smov [#allocation18]  }
  0x27   : > { %2351 = dma.hbm_to_vmem [thread:$0]  (!%p2961_p6), %s360_s24, 256, %s362_s17, [#allocation14], %s3977_s28, %s3977_s28, %s3976_s29  }
  0x28   : > { %s393_s21 = sshll.u32 %s2856_s16, 4  ;;  %s40_s5 = sadd.s32 1, %s2841_s13  ;;  %s394_s21 = int_to_ptr.vmem [resolvable:$true] %s393_s21 }
  0x29   : > { %2357 = dma.hbm_to_vmem [thread:$0]  (!%p2961_p6), %s392_s25, 256, %s394_s21, [#allocation17], %s3977_s28, %s3977_s28, %s3976_s29  }
  0x2a   : > { %s2247_s18 = sadd.s32 4294967294, %s2845_s14   ;;  %p41_p7 = scmp.ge.s32.totalorder %s40_s5, 2 }
  0x2b   : > { %s134_s23 = sadd.s32 1, %s2833_s11  ;;  %p141_p8 = scmp.ne.s32.totalorder %s2833_s11, %s2829_s10 }
  0x2c   : > { %s3990_s5 = smov (%p41_p7, %s40_s5), 0  ;;  %p142_p9 = scmp.eq.s32.totalorder %s2845_s14, 0 }
  0x2d   : > { %p147_p10 = scmp.ne.s32.totalorder %s2829_s10, %s2825_s30  ;;  %s131_s24 = ssub.s32 %s2841_s13, %s3990_s5 }
  0x2e   : > { %s3978_s26 = sadd.s32 4294967295, %s2845_s14   ;;  %p132_p12 = scmp.eq.s32.totalorder %s131_s24, 0 }
  0x2f   : > { %p277_p11 = scmp.eq.s32.totalorder %s3978_s26, 1  ;;  %p3027_p13 = por %p2944_p1, %p147_p10 }
  0x30   : > { %p283_p2 = scmp.eq.s32.totalorder %s2247_s18, 1  ;;  %p143_p4 = por %p142_p9, %p141_p8 }
  0x31   : > { %p3031_p0 = por %p277_p11, %p141_p8  ;;  %s407_s25 = sand.u32 1, %s2833_s11  }
  0x32   : > { %s3036_s15 = scalar_select %p132_p12, %s2833_s11, %s134_s23  }
  0x33   : > { %p3038_p6 = por %p283_p2, %p147_p10  ;;  %s2259_s29 = sshll.u32 %s2841_s13, 3 }
  0x34   : > { %p2374_p7 = scmp.lt.s32.totalorder %s2845_s14, 2  ;;  %s2258_s28 = sshll.u32 %s407_s25, 3 }
  0x35   : > { %s415_s24 = scalar_lea.hbm %s3956_s4, %s2259_s29  ;;  %s411_s0 = scalar_lea.vmem [#allocation12], %s2258_s28 }
  0x36   : > { %s417_s26 = sshll.u32 %s415_s24, 4  ;;  %s419_s1 = sshll.u32 %s411_s0, 4  ;;  %s418_s26 = int_to_ptr.hbm [resolvable:$true] %s417_s26  ;;  %s420_s1 = int_to_ptr.vmem [resolvable:$true] %s419_s1 }
  0x37   : > { %p2359_p11 = pnand %p2374_p7, %p143_p4  ;;  %s408_s18 = scalar_lea.sflag [#allocation3], %s407_s25 }
  0x38   : > { %428 = sbr.rel (%p2949_p3) target bundleno = 583 (0x247), region = 56 }
  0x39   : > { %2361 = dma.hbm_to_vmem [thread:$0]  (!%p2359_p11), %s418_s26, 128, %s420_s1, %s408_s18  }
  0x3d   : > { %2792 = dma.done.wait (%p2944_p1), [#allocation5], 16  }
  0x3e   : > { %2794 = vsyncadd (%p2944_p1), [#allocation5], 4294967280 }
  0x3f   : > { %2796 = dma.done.wait (%p2944_p1), [#allocation8], 16  }
  0x40   : > { %2798 = vsyncadd (%p2944_p1), [#allocation8], 4294967280 }
  0x41   : > { %2800 = dma.done.wait (%p2944_p1), [#allocation6], 16  }
  0x42   : > { %2802 = vsyncadd (%p2944_p1), [#allocation6], 4294967280 }
  0x43   : > { %2804 = dma.done.wait (%p2944_p1), [#allocation11], 16  }
  0x44   : > { %2806 = vsyncadd (%p2944_p1), [#allocation11], 4294967280  ;;  %s3067_s0 = sand.u32 1, %s2829_s10  }
  0x45   : > { %s2265_s1 = sshll.u32 %s3067_s0, 3  ;;  %s451_s20 = scalar_lea.sflag [#allocation3], %s3067_s0 }
  0x46   : > { %s454_s23 = scalar_lea.vmem [#allocation12], %s2265_s1 }
  0x47   : > { %2808 = dma.done.wait (%p3027_p13), %s451_s20, 128  }
  0x48   : > { %2810 = vsyncadd (%p3027_p13), %s451_s20, 4294967168 }
  0x49   : > { %2812 = dma.done.wait (%p2944_p1), [#allocation14], 512  }
  0x4a   : > { %2814 = vsyncadd (%p2944_p1), [#allocation14], 4294966784 }
  0x4b   : > { %2816 = dma.done.wait (%p2944_p1), [#allocation17], 512  }
  0x4c   : > { %2818 = vsyncadd (%p2944_p1), [#allocation17], 4294966784 }
  0x4d   : > { %480 = sfence }
  0x4e   : > { %v755_v0 = vlaneseq  ;;  %v3085_v1 = vld [vmem:[%s454_s23] sm:$0xff]  ;;  %s2271_s25 = sld [smem:[#allocation2 + $0x6]]  ;;  %vm581_vm4 = vcmask 130048  }
  0x4f   : > { %s2272_s29 = sld [smem:[#allocation2 + $0x5]]  ;;  %v512_v2 = vand.u32 2147483647, %v3085_v1 }
  0x50   : > { %v3088_v3 = vshrl.u32 %v755_v0, 7  ;;  %s2273_s27 = sld [smem:[#allocation2 + $0x4]] }
  0x51   : > { %v513_v4 = vadd.f32 1e-12, %v512_v2  ;;  %s3094_s28 = sld [smem:[#allocation2 + $0x3]] }
  0x52   : > { %v3091_v5 = vadd.s32 8, %v3088_v3  ;;  %2442 = vset.pattern.permute.xlu0 %v3088_v3  ;;  %s2277_s19 = sld [smem:[#allocation7 + $0x5]] }
  0x53   : > { %2461 = vrcp.f32 %v513_v4  ;;  %s2278_s16 = sld [smem:[#allocation7 + $0x4]]  ;;  %vm519_vm0 = vweird.f32 %v513_v4  ;;  %v523_v14 = vand.u32 2147483647, %v513_v4  ;;  %v525_v18 = vand.u32 2147483648, %v513_v4 }
  0x54   : > { %2445 = vset.pattern.permute.xlu2 %v3091_v5  ;;  %2443 = vset.pattern.permute.xlu1 %v3091_v5  ;;  %v531_v6 = vstv %s2271_s25  ;;  %s3099_s21 = sld [smem:[#allocation7 + $0x3]] }
  0x55   : > { %v533_v7 = vmul.f32 %v531_v6, %v3085_v1  ;;  %v535_v8 = vstv %s2272_s29  ;;  %s3101_s24 = sld [smem:[#allocation2 + $0x2]]  ;;  %v526_v28 = vor.u32 1.1754944e-38, %v525_v18  ;;  %vm524_vm3 = vcmp.eq.f32.partialorder %v523_v14, 8.507059e+37 }
  0x56   : > { %v539_v10 = vstv %s2273_s27  ;;  %s3104_s26 = sld [smem:[#allocation2 + $0x1]] }
  0x57   : > { %v536_v9 = vadd.f32 %v535_v8, %v533_v7  ;;  %s3106_s18 = sld [smem:[#allocation7 + $0x2]]  ;;  %v543_v16 = vstv %s3094_s28 }
  0x58   : > { %v558_v17 = vstv %s2277_s19  ;;  %s2282_s20 = sld [smem:[#allocation9 + $0x6]] }
  0x59   : > { %v2462_v11 = vpop.eup %2461  ;;  %v537_v12 = vmul.f32 %v536_v9, %v3085_v1  ;;  %v560_v19 = vmul.f32 %v558_v17, %v3085_v1  ;;  %v562_v20 = vstv %s2278_s16  ;;  %s3110_s23 = sld [smem:[#allocation9 + $0x5]] }
  0x5a   : > { %v515_v13 = vmul.f32 %v2462_v11, %v513_v4  ;;  %vm520_vm1 = vweird.f32 %v2462_v11  ;;  %s3113_s25 = sld [smem:[#allocation9 + $0x4]]  ;;  %v566_v26 = vstv %s3099_s21 }
  0x5b   : > { %v540_v15 = vadd.f32 %v539_v10, %v537_v12  ;;  %s3115_s29 = sld [smem:[#allocation2]]  ;;  %v563_v23 = vadd.f32 %v562_v20, %v560_v19  ;;  %vm3121_vm2 = vmor %vm519_vm0, %vm520_vm1  ;;  %v547_v29 = vstv %s3101_s24 }
  0x5c   : > { %v516_v21 = vsub.f32 1.0, %v515_v13  ;;  %s3118_s27 = sld [smem:[#allocation7 + $0x1]]  ;;  %v551_v41 = vstv %s3104_s26 }
  0x5d   : > { %v541_v22 = vmul.f32 %v540_v15, %v3085_v1  ;;  %v564_v30 = vmul.f32 %v563_v23, %v3085_v1  ;;  %s3127_s28 = sld [smem:[#allocation9 + $0x3]]  ;;  %v570_v39 = vstv %s3106_s18 }
  0x5e   : > { %v517_v24 = vmul.f32 %v2462_v11, %v516_v21  ;;  %v1299_v33 = vstv %s2282_s20  ;;  %s3130_s19 = sld [smem:[#allocation9 + $0x2]] }
  0x5f   : > { %v544_v25 = vadd.f32 %v543_v16, %v541_v22  ;;  %v567_v34 = vadd.f32 %v566_v26, %v564_v30  ;;  %v1301_v35 = vmul.f32 %v1299_v33, %v3085_v1  ;;  %v1303_v36 = vstv %s3110_s23  ;;  %s2288_s16 = sld [smem:[#allocation10 + $0x5]] }
  0x60   : > { %v518_v31 = vadd.f32 %v2462_v11, %v517_v24  ;;  %s2289_s21 = sld [smem:[#allocation10 + $0x4]]  ;;  %v1307_v45 = vstv %s3113_s25 }
  0x61   : > { %v545_v32 = vmul.f32 %v544_v25, %v3085_v1  ;;  %v568_v42 = vmul.f32 %v567_v34, %v3085_v1  ;;  %v1304_v43 = vadd.f32 %v1303_v36, %v1301_v35  ;;  %s3139_s24 = sld [smem:[#allocation10 + $0x3]]  ;;  %v555_v50 = vstv %s3115_s29 }
  0x62   : > { %v522_v37 = vsel %vm3121_vm2, %v2462_v11, %v518_v31  ;;  %s3143_s20 = sld [smem:[#allocation7]]  ;;  %v574_v51 = vstv %s3118_s27  ;;  %s2294_s27 = sshll.u32 %s2837_s12, 3 }
  0x63   : > { %v548_v38 = vadd.f32 %v547_v29, %v545_v32  ;;  %v527_v40 = vsel %vm524_vm3, %v526_v28, %v522_v37  ;;  %v571_v47 = vadd.f32 %v570_v39, %v568_v42  ;;  %v1305_v48 = vmul.f32 %v1304_v43, %v3085_v1  ;;  %s3150_s26 = sld [smem:[#allocation10 + $0x2]] }
  0x64   : > { %v528_v46 = vmul.f32 1.6567788e-28, %v527_v40  ;;  %v1311_v54 = vstv %s3127_s28  ;;  %s3153_s18 = sld [smem:[#allocation9 + $0x1]]  ;;  %v1315_v2 = vstv %s3130_s19 }
  0x65   : > { %v549_v44 = vmul.f32 %v548_v38, %v3085_v1  ;;  %v572_v52 = vmul.f32 %v571_v47, %v3085_v1  ;;  %v1308_v53 = vadd.f32 %v1307_v45, %v1305_v48  ;;  %v1326_v55 = vstv %s2288_s16  ;;  %s2292_s23 = sld [smem:[#allocation10 + $0x1]]  ;;  %s2072_s16 = scalar_lea.hbm %s3961_s9, %s2294_s27 }
  0x66   : > { %v1328_v57 = vmul.f32 %v1326_v55, %v3085_v1  ;;  %v1330_v58 = vstv %s2289_s21  ;;  %v529_v59 = vadd.f32 5.4365636e-08, %v528_v46  ;;  %s1322_s25 = sld [smem:[#allocation9]]  ;;  %s510_s21 = scalar_lea.vmem [#allocation19], %s2265_s1 }
  0x67   : > { %v552_v49 = vadd.f32 %v551_v41, %v549_v44  ;;  %v575_v60 = vadd.f32 %v574_v51, %v572_v52  ;;  %v1309_v61 = vmul.f32 %v1308_v53, %v3085_v1  ;;  %v1334_v4 = vstv %s3139_s24  ;;  %s1345_s29 = sld [smem:[#allocation10]]  ;;  %v3230_v53 = vld [vmem:[#allocation13 + $0x8] sm:$0xff]  ;;  %s2074_s24 = sshll.u32 %s510_s21, 4  ;;  %s2075_s24 = int_to_ptr.vmem [resolvable:$true] %s2074_s24 }
  0x68   : > { %v1331_v63 = vadd.f32 %v1330_v58, %v1328_v57  ;;  %v578_v10 = vstv %s3143_s20  ;;  %v604_v55 = vand.u32 4294901760, %v3230_v53  ;;  %v3235_v57 = vld [vmem:[#allocation13] sm:$0xff]  ;;  %s2076_s12 = sshll.u32 %s2072_s16, 4  ;;  %s2061_s20 = scalar_lea.sflag [#allocation4], %s3067_s0  ;;  %s2077_s12 = int_to_ptr.hbm [resolvable:$true] %s2076_s12 }
  0x69   : > { %v553_v56 = vmul.f32 %v552_v49, %v3085_v1  ;;  %v1312_v0 = vadd.f32 %v1311_v54, %v1309_v61  ;;  %v576_v6 = vmul.f32 %v575_v60, %v3085_v1  ;;  %v1338_v16 = vstv %s3150_s26  ;;  %s2753_s26 = sshra.s32 %s2077_s12, 4  ;;  %s2759_s1 = scalar_lea.hbm %s3961_s9, 16  ;;  %s2754_s26 = int_to_ptr.hbm [resolvable:$true] %s2753_s26 }
  0x6a   : > { %v1332_v8 = vmul.f32 %v1331_v63, %v3085_v1  ;;  %v1319_v18 = vstv %s3153_s18  ;;  %v632_v60 = vsub.f32 %v3230_v53, %v604_v55  ;;  %605 = vmatpush.msra.mxu0 %v604_v55  ;;  %v606_v61 = vand.u32 4294901760, %v3235_v57  ;;  %689 = vmatpush.msra.mxu3 %v604_v55  ;;  %s2755_s18 = scalar_lea.hbm %s2754_s26, 8  ;;  %p2760_p9 = scmp.lt.s32.totalorder %s2754_s26, %s3961_s9 }
  0x6b   : > { %v556_v62 = vadd.f32 %v555_v50, %v553_v56  ;;  %v1313_v11 = vmul.f32 %v1312_v0, %v3085_v1  ;;  %v579_v17 = vadd.f32 %v578_v10, %v576_v6  ;;  %v1342_v23 = vstv %s2292_s23  ;;  %v1353_v6 = vld [vmem:[#allocation15 + $0x8] sm:$0xff]  ;;  %p2756_p1 = scmp.ne.s32.totalorder %s2754_s26, %s2755_s18  ;;  %p2761_p10 = scmp.lt.s32.totalorder %s2759_s1, %s2755_s18 }
  0x6c   : > { %v1335_v12 = vadd.f32 %v1334_v4, %v1332_v8  ;;  %v1323_v29 = vstv %s1322_s25  ;;  %664 = vmatpush.msra.mxu2 %v632_v60  ;;  %v638_v0 = vsub.f32 %v3235_v57, %v606_v61  ;;  %607 = vmatpush.msra.mxu0 %v606_v61  ;;  %v1371_v10 = vand.u32 4294901760, %v1353_v6 }
  0x6d   : > { %v582_v7 = vsel %vm581_vm4, %v556_v62, 0.0  ;;  %v3162_v9 = vmul.f32 %v556_v62, %v529_v59  ;;  %v1316_v15 = vadd.f32 %v1315_v2, %v1313_v11  ;;  %v580_v25 = vsub.f32 %v579_v17, %v556_v62  ;;  %691 = vmatpush.msra.mxu3 %v606_v61  ;;  %p2757_p3 = pnand %p2756_p1, %p3031_p0  ;;  %p2762_p12 = por %p2761_p10, %p2760_p9 }
  0x6e   : > { %583 = vadd.xlane.f32.xlu0 %v582_v7  ;;  %v1336_v19 = vmul.f32 %v1335_v12, %v3085_v1  ;;  %v1346_v30 = vstv %s1345_s29  ;;  %v633_v2 = vand.u32 4294901760, %v632_v60  ;;  %667 = vmatpush.msra.mxu2 %v638_v0  ;;  %v639_v8 = vand.u32 4294901760, %v638_v0 }
  0x6f   : > { %v767_v13 = vperm.slane %v3162_v9, 1  ;;  %v754_v14 = vperm.slane %v3162_v9, 0  ;;  %v1317_v20 = vmul.f32 %v1316_v15, %v3085_v1  ;;  %v845_v26 = vperm.slane %v3162_v9, 7  ;;  %p2758_p8 = pneg %p2757_p3 }
  0x70   : > { %v1339_v21 = vadd.f32 %v1338_v16, %v1336_v19  ;;  %v3176_v32 = vmul.f32 %v580_v25, %v529_v59  ;;  %v780_v40 = vperm.slane %v3162_v9, 2  ;;  %v793_v43 = vperm.slane %v3162_v9, 3  ;;  %1372 = vmatpush.msrb.mxu2 %v1371_v10  ;;  %716 = vmatpush.msrb.mxu0 %v633_v2 }
  0x71   : > { %778 = vperm.xlu2 %2445, %v767_v13   ;;  %765 = vperm.xlu1 %2443, %v754_v14   ;;  %v1320_v22 = vadd.f32 %v1319_v18, %v1317_v20  ;;  %v806_v45 = vperm.slane %v3162_v9, 4  ;;  %v819_v47 = vperm.slane %v3162_v9, 5  ;;  %v588_v56 = vsel %vm581_vm4, %v580_v25, 0  ;;  %p2763_p13 = pnand %p2762_p12, %p2758_p8 }
  0x72   : > { %v1340_v24 = vmul.f32 %v1339_v21, %v3085_v1  ;;  %v858_v36 = vperm.slane %v3176_v32, 0  ;;  %v910_v38 = vperm.slane %v3176_v32, 4  ;;  %v871_v39 = vperm.slane %v3176_v32, 1  ;;  %720 = vmatpush.msrb.mxu0 %v639_v8 }
  0x73   : > { %v1321_v27 = vmul.f32 %v1320_v22, %v3085_v1  ;;  %v936_v41 = vperm.slane %v3176_v32, 6  ;;  %v3237_v58 = vand.u32 4294901760, %v588_v56  ;;  %v634_v7 = vsub.f32 %v632_v60, %v633_v2 }
  0x74   : > { %v1343_v28 = vadd.f32 %v1342_v23, %v1340_v24  ;;  %v640_v16 = vsub.f32 %v638_v0, %v639_v8  ;;  %v1399_v18 = vsub.f32 %v1353_v6, %v1371_v10  ;;  %v949_v60 = vperm.slane %v3176_v32, 7 }
  0x75   : > { %v1324_v33 = vadd.f32 %v1323_v29, %v1321_v27  ;;  %v609_v63 = vsub.f32 %v588_v56, %v3237_v58  ;;  %v635_v15 = vand.u32 4294901760, %v634_v7 }
  0x76   : > { %v1344_v31 = vmul.f32 %v1343_v28, %v3085_v1  ;;  %v923_v1 = vperm.slane %v3176_v32, 5  ;;  %v641_v20 = vand.u32 4294901760, %v640_v16  ;;  %v1400_v21 = vand.u32 4294901760, %v1399_v18 }
  0x77   : > { %v3196_v42 = vmul.f32 %v1324_v33, %v529_v59  ;;  %v1349_v51 = vsel %vm581_vm4, %v1324_v33, 0.0  ;;  %v610_v4 = vand.u32 4294901760, %v609_v63  ;;  %670 = vmatmul.f32.vlgmr.msra.gmra.mxu2 %v609_v63  ;;  %636 = vmatpush.msra.mxu1 %v635_v15 }
  0x78   : > { %v1347_v34 = vadd.f32 %v1346_v30, %v1344_v31  ;;  %v1401_v24 = vsub.f32 %v1399_v18, %v1400_v21 }
  0x79   : > { %856 = vperm.xlu2 %2445, %v845_v26   ;;  %2444 = vset.pattern.permute.xlu1 %v3088_v3  ;;  %v1521_v44 = vperm.slane %v3196_v42, 0  ;;  %v1534_v46 = vperm.slane %v3196_v42, 1  ;;  %v1547_v48 = vperm.slane %v3196_v42, 2  ;;  %v1560_v49 = vperm.slane %v3196_v42, 3 }
  0x7a   : > { %v1348_v35 = vsub.f32 %v1347_v34, %v1324_v33  ;;  %v1573_v50 = vperm.slane %v3196_v42, 4  ;;  %v1612_v52 = vperm.slane %v3196_v42, 7  ;;  %695 = vmatmul.f32.vlgmr.msra.gmra.mxu3 %v610_v4  ;;  %642 = vmatpush.msra.mxu1 %v641_v20  ;;  %v1402_v27 = vand.u32 4294901760, %v1401_v24 }
  0x7b   : > { %644 = vmatmul.f32.vlgmr.msra.gmra.mxu1 %v3237_v58  ;;  %v884_v33 = vperm.slane %v3176_v32, 2  ;;  %v832_v34 = vperm.slane %v3162_v9, 6 }
  0x7c   : > { %v3180_v37 = vmul.f32 %v1348_v35, %v529_v59  ;;  %v1355_v54 = vsel %vm581_vm4, %v1348_v35, 0  ;;  %741 = vmatpush.msrb.mxu1 %v604_v55  ;;  %1403 = vmatpush.msrb.mxu3 %v1402_v27 }
  0x7d   : > { %v3242_v62 = vand.u32 4294901760, %v1355_v54 }
  0x7e   : > { %v1677_v59 = vperm.slane %v3180_v37, 4  ;;  %743 = vmatpush.msrb.mxu1 %v606_v61 }
  0x7f   : > { %v1376_v11 = vsub.f32 %v1355_v54, %v3242_v62  ;;  %v1586_v54 = vperm.slane %v3196_v42, 5 }
  0x80   : > { %1456 = vmatpush.msra.mxu1 %v1371_v10 }
  0x81   : > { %869 = vperm.xlu2 %2445, %v858_v36   ;;  %772 = vperm.xlu1 %2444, %v767_v13   ;;  %v611_v13 = vsub.f32 %v609_v63, %v610_v4  ;;  %v1377_v23 = vand.u32 4294901760, %v1376_v11 }
  0x82   : > { %759 = vperm.xlu0 %2442, %v754_v14   ;;  %v3252_v14 = vld [vmem:[#allocation15] sm:$0xff] }
  0x83   : > { %v1373_v17 = vand.u32 4294901760, %v3252_v14  ;;  %v612_v19 = vand.u32 4294901760, %v611_v13  ;;  %745 = vmatmul.f32.vlgmr.msrb.gmra.mxu1 %v3237_v58 }
  0x85   : > { %1374 = vmatpush.msrb.mxu2 %v1373_v17  ;;  %v1405_v22 = vsub.f32 %v3252_v14, %v1373_v17  ;;  %613 = vmatmul.f32.vlgmr.msra.gmra.mxu0 %v612_v19 }
  0x86   : > { %1431 = vmatpush.msra.mxu0 %v1399_v18  ;;  %1458 = vmatpush.msra.mxu1 %v1373_v17  ;;  %v1703_v18 = vperm.slane %v3180_v37, 6 }
  0x87   : > { %v1406_v25 = vand.u32 4294901760, %v1405_v22  ;;  %1483 = vmatpush.msra.mxu2 %v1400_v21 }
  0x88   : > { %1434 = vmatpush.msra.mxu0 %v1405_v22 }
  0x89   : > { %921 = vperm.xlu2 %2445, %v910_v38   ;;  %2446 = vset.pattern.permute.xlu1 %v3091_v5  ;;  %v1407_v28 = vsub.f32 %v1405_v22, %v1406_v25 }
  0x8a   : > { %876 = vperm.xlu0 %2442, %v871_v39   ;;  %1487 = vmatpush.msra.mxu2 %v1406_v25  ;;  %v1664_v25 = vperm.slane %v3180_v37, 3 }
  0x8b   : > { %v1408_v31 = vand.u32 4294901760, %v1407_v28  ;;  %1462 = vmatmul.f32.vlgmr.msra.gmra.mxu1 %v1377_v23 }
  0x8d   : > { %1409 = vmatpush.msrb.mxu3 %v1408_v31  ;;  %722 = vmatmul.f32.vlgmr.msrb.gmra.mxu0 %v3237_v58 }
  0x8e   : > { %1411 = vmatmul.f32.vlgmr.msrb.gmra.mxu3 %v3242_v62 }
  0x8f   : > { %1508 = vmatpush.msra.mxu3 %v1371_v10 }
  0x91   : > { %934 = vperm.xlu2 %2445, %v923_v1   ;;  %791 = vperm.xlu1 %2446, %v780_v40  }
  0x92   : > { %941 = vperm.xlu0 %2442, %v936_v41   ;;  %1510 = vmatpush.msra.mxu3 %v1373_v17  ;;  %v1651_v17 = vperm.slane %v3180_v37, 2 }
  0x95   : > { %1437 = vmatmul.f32.vlgmr.msra.gmra.mxu0 %v1376_v11 }
  0x96   : > { %1512 = vmatmul.f32.vlgmr.msra.gmra.mxu3 %v3242_v62 }
  0x99   : > { %804 = vperm.xlu1 %2446, %v793_v43   ;;  %2451 = vset.pattern.permute.xlu2 %v3088_v3 }
  0x9a   : > { %1526 = vperm.xlu0 %2442, %v1521_v44  }
  0xa1   : > { %817 = vperm.xlu1 %2446, %v806_v45  }
  0xa2   : > { %1539 = vperm.xlu0 %2442, %v1534_v46  }
  0xa9   : > { %830 = vperm.xlu1 %2446, %v819_v47  }
  0xaa   : > { %1552 = vperm.xlu0 %2442, %v1547_v48  }
  0xb1   : > { %2447 = vset.pattern.permute.xlu1 %v3088_v3 }
  0xb2   : > { %1565 = vperm.xlu0 %2442, %v1560_v49  }
  0xb9   : > { %850 = vperm.xlu1 %2447, %v845_v26   ;;  %v1378_v26 = vsub.f32 %v1376_v11, %v1377_v23 }
  0xba   : > { %1350 = vadd.xlane.f32.xlu2 %v1349_v51  ;;  %1578 = vperm.xlu0 %2442, %v1573_v50  }
  0xbb   : > { %v1379_v30 = vand.u32 4294901760, %v1378_v26 }
  0xbd   : > { %1380 = vmatmul.f32.vlgmr.msrb.gmra.mxu2 %v1379_v30 }
  0xc1   : > { %863 = vperm.xlu1 %2447, %v858_v36   ;;  %v897_v36 = vperm.slane %v3176_v32, 3  ;;  %v1625_v32 = vperm.slane %v3180_v37, 0 }
  0xc2   : > { %1617 = vperm.xlu0 %2442, %v1612_v52  }
  0xc5   : > { %1489 = vmatmul.f32.vlgmr.msra.gmra.mxu2 %v3242_v62 }
  0xc9   : > { %2448 = vset.pattern.permute.xlu1 %v3091_v5 }
  0xca   : > { %1682 = vperm.xlu0 %2442, %v1677_v59  }
  0xcb   : > { %v3250_v12 = vpop.permute.xlu2 %778 }
  0xd1   : > { %882 = vperm.xlu1 %2448, %v871_v39  }
  0xd2   : > { %785 = vperm.xlu2 %2451, %v780_v40   ;;  %2456 = vset.pattern.permute.xlu0 %v3091_v5 }
  0xd3   : > { %v3262_v29 = vpop.permute.xlu2 %856 }
  0xd9   : > { %895 = vperm.xlu1 %2448, %v884_v33  }
  0xda   : > { %798 = vperm.xlu2 %2451, %v793_v43   ;;  %843 = vperm.xlu0 %2456, %v832_v34  }
  0xdb   : > { %v870_v35 = vpop.permute.xlu2 %869 }
  0xdc   : > { %v963_v39 = vmul.f32 %v870_v35, %v3230_v53 }
  0xe1   : > { %2449 = vset.pattern.permute.xlu1 %v3088_v3  ;;  %v3282_v51 = vpop.xlane.xlu0 %583 }
  0xe2   : > { %811 = vperm.xlu2 %2451, %v806_v45   ;;  %908 = vperm.xlu0 %2456, %v897_v36   ;;  %v1638_v45 = vperm.slane %v3180_v37, 1 }
  0xe3   : > { %v766_v40 = vpop.permute.xlu1 %765  ;;  %v922_v62 = vpop.permute.xlu2 %921 }
  0xe4   : > { %v979_v43 = vadd.f32 %v963_v39, %v766_v40  ;;  %v971_v0 = vmul.f32 %v922_v62, %v3230_v53 }
  0xe9   : > { %915 = vperm.xlu1 %2449, %v910_v38  }
  0xea   : > { %824 = vperm.xlu2 %2451, %v819_v47   ;;  %1597 = vperm.xlu0 %2456, %v1586_v54  }
  0xeb   : > { %v935_v6 = vpop.permute.xlu2 %934 }
  0xec   : > { %v973_v7 = vmul.f32 %v935_v6, %v3230_v53 }
  0xf1   : > { %928 = vperm.xlu1 %2449, %v923_v1  }
  0xf2   : > { %837 = vperm.xlu2 %2451, %v832_v34   ;;  %1649 = vperm.xlu0 %2456, %v1638_v45  }
  0xf3   : > { %v773_v38 = vpop.permute.xlu1 %772 }
  0xf4   : > { %v760_v55 = vpop.permute.xlu0 %759 }
  0xf9   : > { %2450 = vset.pattern.permute.xlu1 %v3091_v5 }
  0xfa   : > { %889 = vperm.xlu2 %2451, %v884_v33   ;;  %1714 = vperm.xlu0 %2456, %v1703_v18   ;;  %v1599_v33 = vperm.slane %v3196_v42, 6 }
  0xfc   : > { %v877_v56 = vpop.permute.xlu0 %876 }
  0xfd   : > { %v964_v9 = vmul.f32 %v877_v56, %v3235_v57 }
  0xff   : > { %v980_v47 = vadd.f32 %v964_v9, %v773_v38 }
 0x101   : > { %947 = vperm.xlu1 %2450, %v936_v41  }
 0x102   : > { %902 = vperm.xlu2 %2451, %v897_v36  }
 0x103   : > { %v3292_v58 = vpop.permute.xlu1 %791 }
 0x104   : > { %v3294_v1 = vpop.permute.xlu0 %941 }
 0x109   : > { %960 = vperm.xlu1 %2450, %v949_v60  }
 0x10a   : > { %954 = vperm.xlu2 %2451, %v949_v60  }
 0x10b   : > { %v3297_v61 = vpop.permute.xlu1 %804 }
 0x10c   : > { %v3299_v63 = vpop.permute.xlu0 %1526 }
 0x111   : > { %1532 = vperm.xlu1 %2450, %v1521_v44   ;;  %v3316_v44 = vand.u32 2147483647, %v979_v43 }
 0x112   : > { %1591 = vperm.xlu2 %2451, %v1586_v54  }
 0x113   : > { %v818_v41 = vpop.permute.xlu1 %817  ;;  %2463 = vrsqrt.f32 %v3316_v44  ;;  %vm1029_vm5 = vcmp.eq.f32.partialorder %v3316_v44, inf  ;;  %vm1031_vm6 = vcmp.eq.f32.partialorder %v3316_v44, 0.0 }
 0x114   : > { %v987_v2 = vadd.f32 %v971_v0, %v818_v41  ;;  %v3304_v4 = vpop.permute.xlu0 %1539  ;;  %v1690_v0 = vperm.slane %v3180_v37, 5 }
 0x116   : > { %v3355_v36 = vand.u32 2147483647, %v987_v2 }
 0x118   : > { %vm1125_vm13 = vcmp.eq.f32.partialorder %v3355_v36, inf  ;;  %vm1127_vm14 = vcmp.eq.f32.partialorder %v3355_v36, 0.0 }
 0x119   : > { %1545 = vperm.xlu1 %2450, %v1534_v46   ;;  %v2464_v16 = vpop.eup %2463 }
 0x11a   : > { %1630 = vperm.xlu2 %2451, %v1625_v32   ;;  %v1023_v19 = vmul.f32 %v2464_v16, %v3316_v44 }
 0x11b   : > { %v831_v8 = vpop.permute.xlu1 %830 }
 0x11c   : > { %v989_v10 = vadd.f32 %v973_v7, %v831_v8  ;;  %v3312_v11 = vpop.permute.xlu0 %1552  ;;  %v1024_v22 = vmul.f32 %v2464_v16, %v1023_v19 }
 0x11e   : > { %v3363_v9 = vand.u32 2147483647, %v989_v10 }
 0x120   : > { %vm1149_vm15 = vcmp.eq.f32.partialorder %v3363_v9, inf }
 0x121   : > { %1558 = vperm.xlu1 %2450, %v1547_v48  }
 0x122   : > { %1643 = vperm.xlu2 %2451, %v1638_v45  }
 0x124   : > { %v3318_v13 = vpop.permute.xlu0 %1565 }
 0x129   : > { %1571 = vperm.xlu1 %2450, %v1560_v49   ;;  %v3337_v49 = vand.u32 2147483647, %v980_v47 }
 0x12a   : > { %2455 = vset.pattern.permute.xlu2 %v3091_v5 }
 0x12b   : > { %v3324_v46 = vpop.permute.xlu1 %850  ;;  %2465 = vrsqrt.f32 %v3337_v49  ;;  %vm1041_vm9 = vcmp.eq.f32.partialorder %v3337_v49, inf  ;;  %vm1043_vm10 = vcmp.eq.f32.partialorder %v3337_v49, 0.0 }
 0x12c   : > { %v3329_v48 = vpop.permute.xlu0 %1578 }
 0x12d   : > { %v3326_v15 = vpop.xlane.xlu2 %1350 }
 0x131   : > { %1584 = vperm.xlu1 %2450, %v1573_v50   ;;  %v1025_v50 = vmul.f32 0.5, %v1024_v22  ;;  %v2466_v28 = vpop.eup %2465 }
 0x132   : > { %1662 = vperm.xlu2 %2455, %v1651_v17   ;;  %v1035_v34 = vmul.f32 %v2466_v28, %v3337_v49 }
 0x133   : > { %v864_v20 = vpop.permute.xlu1 %863  ;;  %v1026_v30 = vsub.f32 1.5, %v1025_v50 }
 0x134   : > { %v962_v21 = vmul.f32 %v864_v20, %v3235_v57  ;;  %v3346_v27 = vpop.permute.xlu0 %1617  ;;  %v1036_v54 = vmul.f32 %v2466_v28, %v1035_v34 }
 0x135   : > { %v3342_v23 = vpop.permute.xlu2 %785  ;;  %v1027_v39 = vmul.f32 %v2464_v16, %v1026_v30  ;;  %v1032_v16 = vand.u32 2147483648, %v3316_v44 }
 0x136   : > { %v978_v24 = vadd.f32 %v962_v21, %v760_v55  ;;  %v1037_v41 = vmul.f32 0.5, %v1036_v54  ;;  %v3382_v21 = vld [vmem:[#allocation16 + $0x8] sm:$0xff] }
 0x137   : > { %v1028_v56 = vmul.f32 %v1027_v39, %v3316_v44 }
 0x138   : > { %v994_v26 = vand.u32 2147483647, %v978_v24 }
 0x139   : > { %2452 = vset.pattern.permute.xlu1 %v3088_v3  ;;  %v1030_v7 = vsel %vm1029_vm5, %v3316_v44, %v1028_v56  ;;  %v3391_v44 = vld [vmem:[#allocation16] sm:$0xff] }
 0x13a   : > { %2467 = vrsqrt.f32 %v994_v26  ;;  %1675 = vperm.xlu2 %2455, %v1664_v25   ;;  %v1033_v22 = vsel %vm1031_vm6, %v1032_v16, %v1030_v7  ;;  %vm1017_vm7 = vcmp.eq.f32.partialorder %v994_v26, inf  ;;  %v1020_v24 = vand.u32 2147483648, %v994_v26 }
 0x13b   : > { %2469 = vrsqrt.f32 %v3355_v36  ;;  %vm1019_vm8 = vcmp.eq.f32.partialorder %v994_v26, 0.0 }
 0x13c   : > { %v3358_v43 = vpop.permute.xlu0 %1682  ;;  %2471 = vrsqrt.f32 %v3363_v9 }
 0x13d   : > { %v3351_v31 = vpop.permute.xlu2 %798 }
 0x140   : > { %v2468_v35 = vpop.eup %2467 }
 0x141   : > { %v1011_v40 = vmul.f32 %v2468_v35, %v994_v26  ;;  %1604 = vperm.xlu1 %2452, %v1599_v33   ;;  %v3375_v10 = vpop.eup %2469 }
 0x142   : > { %2458 = vset.pattern.permute.xlu2 %v3088_v3  ;;  %v1119_v34 = vmul.f32 %v3375_v10, %v3355_v36 }
 0x143   : > { %v1012_v55 = vmul.f32 %v2468_v35, %v1011_v40  ;;  %v883_v45 = vpop.permute.xlu1 %882 }
 0x144   : > { %v965_v38 = vmul.f32 %v883_v45, %v3230_v53  ;;  %v1203_v45 = vmul.f32 %v1033_v22, %v3382_v21 }
 0x145   : > { %v1013_v47 = vmul.f32 0.5, %v1012_v55  ;;  %v3365_v60 = vpop.permute.xlu2 %811  ;;  %v3394_v55 = vpop.eup %2471 }
 0x146   : > { %v981_v62 = vadd.f32 %v965_v38, %v3250_v12  ;;  %v1038_v12 = vsub.f32 1.5, %v1037_v41  ;;  %v1120_v41 = vmul.f32 %v3375_v10, %v1119_v34  ;;  %v1143_v7 = vmul.f32 %v3394_v55, %v3363_v9 }
 0x147   : > { %v1014_v2 = vsub.f32 1.5, %v1013_v47 }
 0x148   : > { %v3370_v6 = vand.u32 2147483647, %v981_v62  ;;  %v1039_v38 = vmul.f32 %v2466_v28, %v1038_v12  ;;  %v1121_v12 = vmul.f32 0.5, %v1120_v41 }
 0x149   : > { %v1015_v8 = vmul.f32 %v2468_v35, %v1014_v2  ;;  %2453 = vset.pattern.permute.xlu1 %v3091_v5 }
 0x14a   : > { %2473 = vrsqrt.f32 %v3370_v6  ;;  %1695 = vperm.xlu2 %2458, %v1690_v0   ;;  %v1040_v28 = vmul.f32 %v1039_v38, %v3337_v49  ;;  %vm1053_vm11 = vcmp.eq.f32.partialorder %v3370_v6, inf  ;;  %vm1055_vm12 = vcmp.eq.f32.partialorder %v3370_v6, 0.0 }
 0x14b   : > { %v1016_v19 = vmul.f32 %v1015_v8, %v994_v26  ;;  %v896_v20 = vpop.permute.xlu1 %895 }
 0x14c   : > { %v967_v50 = vmul.f32 %v896_v20, %v3230_v53  ;;  %v3385_v30 = vpop.permute.xlu0 %843  ;;  %v1042_v22 = vsel %vm1041_vm9, %v3337_v49, %v1040_v28 }
 0x14d   : > { %v1018_v35 = vsel %vm1017_vm7, %v994_v26, %v1016_v19  ;;  %v3389_v39 = vpop.permute.xlu2 %824  ;;  %vm1151_vm7 = vcmp.eq.f32.partialorder %v3363_v9, 0.0 }
 0x14e   : > { %v1021_v40 = vsel %vm1019_vm8, %v1020_v24, %v1018_v35  ;;  %v983_v54 = vadd.f32 %v967_v50, %v3292_v58  ;;  %v974_v58 = vmul.f32 %v3294_v1, %v3235_v57  ;;  %v1144_v24 = vmul.f32 %v3394_v55, %v1143_v7 }
 0x14f   : > { %v1202_v56 = vmul.f32 %v1021_v40, %v3391_v44  ;;  %v1044_v35 = vand.u32 2147483648, %v3337_v49  ;;  %v1122_v40 = vsub.f32 1.5, %v1121_v12 }
 0x150   : > { %v2474_v47 = vpop.eup %2473  ;;  %v3398_v62 = vand.u32 2147483647, %v983_v54  ;;  %v1145_v41 = vmul.f32 0.5, %v1144_v24 }
 0x151   : > { %v1047_v26 = vmul.f32 %v2474_v47, %v3370_v6  ;;  %1610 = vperm.xlu1 %2453, %v1599_v33   ;;  %v3402_v2 = vadd.f32 %v1203_v45, %v1202_v56  ;;  %v1045_v56 = vsel %vm1043_vm10, %v1044_v35, %v1042_v22  ;;  %v1123_v42 = vmul.f32 %v3375_v10, %v1122_v40 }
 0x152   : > { %2475 = vrsqrt.f32 %v3398_v62  ;;  %1708 = vperm.xlu2 %2458, %v1703_v18   ;;  %vm1077_vm0 = vcmp.eq.f32.partialorder %v3398_v62, inf  ;;  %vm1079_vm1 = vcmp.eq.f32.partialorder %v3398_v62, 0.0 }
 0x153   : > { %v1048_v8 = vmul.f32 %v2474_v47, %v1047_v26  ;;  %v1124_v24 = vmul.f32 %v1123_v42, %v3355_v36 }
 0x154   : > { %v909_v16 = vpop.permute.xlu0 %908 }
 0x155   : > { %v1049_v19 = vmul.f32 0.5, %v1048_v8  ;;  %v969_v33 = vmul.f32 %v909_v16, %v3230_v53  ;;  %v838_v20 = vpop.permute.xlu2 %837 }
 0x156   : > { %v990_v1 = vadd.f32 %v974_v58, %v838_v20  ;;  %v1146_v20 = vsub.f32 1.5, %v1145_v41 }
 0x157   : > { %v1050_v18 = vsub.f32 1.5, %v1049_v19  ;;  %v985_v50 = vadd.f32 %v969_v33, %v3297_v61  ;;  %v1716_v19 = vperm.slane %v3180_v37, 7  ;;  %v1204_v33 = vmul.f32 %v1045_v56, %v3391_v44 }
 0x158   : > { %v2476_v34 = vpop.eup %2475  ;;  %v3427_v26 = vand.u32 2147483647, %v990_v1  ;;  %v1147_v35 = vmul.f32 %v3394_v55, %v1146_v20  ;;  %v1126_v56 = vsel %vm1125_vm13, %v3355_v36, %v1124_v24  ;;  %v1128_v55 = vand.u32 2147483648, %v3355_v36 }
 0x159   : > { %v1051_v54 = vmul.f32 %v2474_v47, %v1050_v18  ;;  %v1071_v45 = vmul.f32 %v2476_v34, %v3398_v62  ;;  %v3420_v38 = vand.u32 2147483647, %v985_v50  ;;  %1623 = vperm.xlu1 %2453, %v1612_v52   ;;  %v1056_v47 = vand.u32 2147483648, %v3370_v6 }
 0x15a   : > { %2460 = vset.pattern.permute.xlu2 %v3091_v5  ;;  %v1219_v50 = vrot.slane %v3402_v2, 4  ;;  %vm1161_vm13 = vcmp.eq.f32.partialorder %v3427_v26, inf }
 0x15b   : > { %v1052_v61 = vmul.f32 %v1051_v54, %v3370_v6  ;;  %v916_v49 = vpop.permute.xlu1 %915  ;;  %v1072_v58 = vmul.f32 %v2476_v34, %v1071_v45  ;;  %2477 = vrsqrt.f32 %v3420_v38  ;;  %vm1101_vm6 = vcmp.eq.f32.partialorder %v3420_v38, inf }
 0x15c   : > { %v970_v28 = vmul.f32 %v916_v49, %v3235_v57  ;;  %2479 = vrsqrt.f32 %v3427_v26  ;;  %v1220_v49 = vadd.f32 %v1219_v50, %v3402_v2  ;;  %vm1103_vm8 = vcmp.eq.f32.partialorder %v3420_v38, 0.0 }
 0x15d   : > { %v1054_v52 = vsel %vm1053_vm11, %v3370_v6, %v1052_v61  ;;  %v890_v7 = vpop.permute.xlu2 %889  ;;  %v1073_v10 = vmul.f32 0.5, %v1072_v58 }
 0x15e   : > { %v1057_v8 = vsel %vm1055_vm12, %v1056_v47, %v1054_v52  ;;  %v986_v16 = vadd.f32 %v970_v28, %v3365_v60  ;;  %v966_v12 = vmul.f32 %v890_v7, %v3235_v57  ;;  %v1148_v47 = vmul.f32 %v1147_v35, %v3363_v9 }
 0x15f   : > { %v1205_v1 = vmul.f32 %v1057_v8, %v3382_v21  ;;  %v1074_v54 = vsub.f32 1.5, %v1073_v10  ;;  %v1129_v52 = vsel %vm1127_vm14, %v1128_v55, %v1126_v56  ;;  %v1221_v2 = vrot.slane %v1220_v49, 2 }
 0x160   : > { %v3441_v22 = vand.u32 2147483647, %v986_v16  ;;  %v982_v6 = vadd.f32 %v966_v12, %v3342_v23  ;;  %v3487_v10 = vmul.f32 %v1129_v52, %v3382_v21  ;;  %vm1282_vm14 = vcmask 1041409  }
 0x161   : > { %1636 = vperm.xlu1 %2453, %v1625_v32   ;;  %v3447_v60 = vadd.f32 %v1205_v1, %v1204_v33  ;;  %v3449_v18 = vpop.eup %2477  ;;  %v1075_v7 = vmul.f32 %v2476_v34, %v1074_v54  ;;  %v3483_v34 = vsel %vm1149_vm15, %v3363_v9, %v1148_v47  ;;  %vm1163_vm15 = vcmp.eq.f32.partialorder %v3427_v26, 0.0 }
 0x162   : > { %2481 = vrsqrt.f32 %v3441_v22  ;;  %1727 = vperm.xlu2 %2460, %v1716_v19   ;;  %v3456_v40 = vand.u32 2147483647, %v982_v6  ;;  %v3460_v45 = vpop.eup %2479  ;;  %v1095_v41 = vmul.f32 %v3449_v18, %v3420_v38  ;;  %vm1113_vm2 = vcmp.eq.f32.partialorder %v3441_v22, inf }
 0x163   : > { %v929_v23 = vpop.permute.xlu1 %928  ;;  %v1155_v8 = vmul.f32 %v3460_v45, %v3427_v26  ;;  %v1076_v6 = vmul.f32 %v1075_v7, %v3398_v62  ;;  %v1226_v47 = vrot.slane %v3447_v60, 4  ;;  %vm1115_vm3 = vcmp.eq.f32.partialorder %v3441_v22, 0.0 }
 0x164   : > { %v972_v32 = vmul.f32 %v929_v23, %v3235_v57  ;;  %2483 = vrsqrt.f32 %v3456_v40  ;;  %v1096_v16 = vmul.f32 %v3449_v18, %v1095_v41  ;;  %vm1065_vm4 = vcmp.eq.f32.partialorder %v3456_v40, inf }
 0x165   : > { %v903_v61 = vpop.permute.xlu2 %902  ;;  %v1156_v50 = vmul.f32 %v3460_v45, %v1155_v8  ;;  %vm1067_vm5 = vcmp.eq.f32.partialorder %v3456_v40, 0.0 }
 0x166   : > { %v988_v58 = vadd.f32 %v972_v32, %v3389_v39  ;;  %v968_v28 = vmul.f32 %v903_v61, %v3235_v57  ;;  %v1152_v39 = vand.u32 2147483648, %v3363_v9  ;;  %v1097_v24 = vmul.f32 0.5, %v1096_v16 }
 0x167   : > { %v1080_v32 = vand.u32 2147483648, %v3398_v62  ;;  %v3498_v61 = vadd.f32 %v1221_v2, %v1220_v49  ;;  %v1157_v49 = vmul.f32 0.5, %v1156_v50  ;;  %v1116_v16 = vand.u32 2147483648, %v3441_v22 }
 0x168   : > { %v2482_v42 = vpop.eup %2481  ;;  %v3476_v33 = vand.u32 2147483647, %v988_v58  ;;  %v984_v36 = vadd.f32 %v968_v28, %v3351_v31  ;;  %v1078_v58 = vsel %vm1077_vm0, %v3398_v62, %v1076_v6  ;;  %v1227_v6 = vadd.f32 %v1226_v47, %v3447_v60 }
 0x169   : > { %v1107_v12 = vmul.f32 %v2482_v42, %v3441_v22  ;;  %2454 = vset.pattern.permute.xlu1 %v3088_v3  ;;  %v1158_v62 = vsub.f32 1.5, %v1157_v49  ;;  %v1104_v47 = vand.u32 2147483648, %v3420_v38 }
 0x16a   : > { %v2484_v20 = vpop.eup %2483  ;;  %2485 = vrsqrt.f32 %v3476_v33  ;;  %v3494_v23 = vand.u32 2147483647, %v984_v36  ;;  %vm1137_vm9 = vcmp.eq.f32.partialorder %v3476_v33, inf  ;;  %vm1139_vm10 = vcmp.eq.f32.partialorder %v3476_v33, 0.0 }
 0x16b   : > { %v1108_v1 = vmul.f32 %v2482_v42, %v1107_v12  ;;  %v1059_v31 = vmul.f32 %v2484_v20, %v3456_v40 }
 0x16c   : > { %2487 = vrsqrt.f32 %v3494_v23  ;;  %vm1089_vm11 = vcmp.eq.f32.partialorder %v3494_v23, inf  ;;  %vm1091_vm12 = vcmp.eq.f32.partialorder %v3494_v23, 0.0 }
 0x16d   : > { %v1109_v35 = vmul.f32 0.5, %v1108_v1  ;;  %v955_v54 = vpop.permute.xlu2 %954  ;;  %v1060_v56 = vmul.f32 %v2484_v20, %v1059_v31  ;;  %v1081_v1 = vsel %vm1079_vm1, %v1080_v32, %v1078_v58  ;;  %v1068_v32 = vand.u32 2147483648, %v3456_v40 }
 0x16e   : > { %v976_v41 = vmul.f32 %v955_v54, %v3235_v57  ;;  %v1098_v57 = vsub.f32 1.5, %v1097_v24  ;;  %v1228_v58 = vrot.slane %v1227_v6, 2 }
 0x16f   : > { %v1110_v55 = vsub.f32 1.5, %v1109_v35  ;;  %v1061_v28 = vmul.f32 0.5, %v1060_v56 }
 0x170   : > { %v992_v52 = vadd.f32 %v976_v41, %v3324_v46  ;;  %v2486_v7 = vpop.eup %2485  ;;  %v1099_v35 = vmul.f32 %v3449_v18, %v1098_v57 }
 0x171   : > { %v1111_v8 = vmul.f32 %v2482_v42, %v1110_v55  ;;  %1656 = vperm.xlu1 %2454, %v1651_v17   ;;  %v1062_v12 = vsub.f32 1.5, %v1061_v28  ;;  %v1131_v36 = vmul.f32 %v2486_v7, %v3476_v33  ;;  %v1207_v55 = vmul.f32 %v1081_v1, %v3382_v21 }
 0x172   : > { %v3513_v2 = vand.u32 2147483647, %v992_v52  ;;  %v2488_v50 = vpop.eup %2487 }
 0x173   : > { %v1112_v46 = vmul.f32 %v1111_v8, %v3441_v22  ;;  %v948_v42 = vpop.permute.xlu1 %947  ;;  %v1063_v17 = vmul.f32 %v2484_v20, %v1062_v12  ;;  %v1132_v31 = vmul.f32 %v2486_v7, %v1131_v36  ;;  %v1083_v20 = vmul.f32 %v2488_v50, %v3494_v23 }
 0x174   : > { %2489 = vrsqrt.f32 %v3513_v2  ;;  %v975_v24 = vmul.f32 %v948_v42, %v3230_v53  ;;  %v1159_v8 = vmul.f32 %v3460_v45, %v1158_v62  ;;  %v1229_v42 = vadd.f32 %v1228_v58, %v1227_v6 }
 0x175   : > { %v1114_v54 = vsel %vm1113_vm2, %v3441_v22, %v1112_v46  ;;  %v1064_v60 = vmul.f32 %v1063_v17, %v3456_v40  ;;  %v1133_v56 = vmul.f32 0.5, %v1132_v31  ;;  %v1084_v57 = vmul.f32 %v2488_v50, %v1083_v20 }
 0x176   : > { %v991_v41 = vadd.f32 %v975_v24, %v3385_v30  ;;  %v1117_v18 = vsel %vm1115_vm3, %v1116_v16, %v1114_v54  ;;  %v1100_v30 = vmul.f32 %v1099_v35, %v3420_v38  ;;  %v1140_v17 = vand.u32 2147483648, %v3476_v33 }
 0x177   : > { %v1066_v28 = vsel %vm1065_vm4, %v3456_v40, %v1064_v60  ;;  %v1134_v52 = vsub.f32 1.5, %v1133_v56  ;;  %v1210_v16 = vmul.f32 %v1117_v18, %v3391_v44  ;;  %v1085_v46 = vmul.f32 0.5, %v1084_v57 }
 0x178   : > { %v3540_v49 = vand.u32 2147483647, %v991_v41  ;;  %v1069_v22 = vsel %vm1067_vm5, %v1068_v32, %v1066_v28  ;;  %v1092_v56 = vand.u32 2147483648, %v3494_v23  ;;  %v1230_v20 = vrot.slane %v1229_v42, 1 }
 0x179   : > { %1669 = vperm.xlu1 %2454, %v1664_v25   ;;  %v1206_v36 = vmul.f32 %v1069_v22, %v3391_v44  ;;  %v1135_v1 = vmul.f32 %v2486_v7, %v1134_v52  ;;  %v1086_v31 = vsub.f32 1.5, %v1085_v46  ;;  %v1102_v7 = vsel %vm1101_vm6, %v3420_v38, %v1100_v30 }
 0x17a   : > { %v3549_v12 = vpop.eup %2489  ;;  %2491 = vrsqrt.f32 %v3540_v49  ;;  %v1246_v54 = vadd.f32 %v3487_v10, %v1210_v16  ;;  %v1160_v57 = vmul.f32 %v1159_v8, %v3427_v26  ;;  %v1164_v8 = vand.u32 2147483648, %v3427_v26 }
 0x17b   : > { %v1179_v40 = vmul.f32 %v3549_v12, %v3513_v2  ;;  %v961_v45 = vpop.permute.xlu1 %960  ;;  %v1136_v25 = vmul.f32 %v1135_v1, %v3476_v33  ;;  %v1232_v62 = vadd.f32 %v1207_v55, %v1206_v36  ;;  %v1087_v60 = vmul.f32 %v2488_v50, %v1086_v31 }
 0x17c   : > { %v977_v24 = vmul.f32 %v961_v45, %v3230_v53  ;;  %v1223_v50 = vrot.slane %v3498_v61, 1  ;;  %v1105_v55 = vsel %vm1103_vm8, %v1104_v47, %v1102_v7  ;;  %v1247_v31 = vrot.slane %v1246_v54, 4 }
 0x17d   : > { %v1180_v35 = vmul.f32 %v3549_v12, %v1179_v40  ;;  %v1138_v32 = vsel %vm1137_vm9, %v3476_v33, %v1136_v25  ;;  %v1233_v41 = vrot.slane %v1232_v62, 4  ;;  %v1088_v58 = vmul.f32 %v1087_v60, %v3494_v23 }
 0x17e   : > { %v993_v6 = vadd.f32 %v977_v24, %v3262_v29  ;;  %v1141_v53 = vsel %vm1139_vm10, %v1140_v17, %v1138_v32  ;;  %v1153_v33 = vsel %vm1151_vm7, %v1152_v39, %v3483_v34  ;;  %v1224_v9 = vadd.f32 %v1223_v50, %v3498_v61 }
 0x17f   : > { %v1181_v29 = vmul.f32 0.5, %v1180_v35  ;;  %v1090_v52 = vsel %vm1089_vm11, %v3494_v23, %v1088_v58  ;;  %v1212_v38 = vmul.f32 %v1141_v53, %v3391_v44  ;;  %v1234_v47 = vadd.f32 %v1233_v41, %v1232_v62 }
 0x180   : > { %v2492_v18 = vpop.eup %2491  ;;  %v3573_v10 = vand.u32 2147483647, %v993_v6  ;;  %v1093_v30 = vsel %vm1091_vm12, %v1092_v56, %v1090_v52  ;;  %v1213_v16 = vmul.f32 %v1153_v33, %v3382_v21  ;;  %v1209_v36 = vmul.f32 %v1105_v55, %v3382_v21 }
 0x181   : > { %v1167_v28 = vmul.f32 %v2492_v18, %v3540_v49  ;;  %2457 = vset.pattern.permute.xlu1 %v3091_v5  ;;  %v1231_v5 = vadd.f32 %v1230_v20, %v1229_v42  ;;  %v1182_v39 = vsub.f32 1.5, %v1181_v29  ;;  %v1208_v23 = vmul.f32 %v1093_v30, %v3391_v44 }
 0x182   : > { %2493 = vrsqrt.f32 %v3573_v10  ;;  %v1235_v1 = vrot.slane %v1234_v47, 2  ;;  %v1253_v46 = vadd.f32 %v1213_v16, %v1212_v38  ;;  %v1162_v40 = vsel %vm1161_vm13, %v3427_v26, %v1160_v57 }
 0x183   : > { %v1168_v22 = vmul.f32 %v2492_v18, %v1167_v28  ;;  %v1239_v42 = vadd.f32 %v1209_v36, %v1208_v23  ;;  %v1283_v25 = vsel %vm1282_vm14, %v1231_v5, %v1224_v9  ;;  %v1183_v24 = vmul.f32 %v3549_v12, %v1182_v39  ;;  %v3608_v56 = vpop.permute.xlu1 %1532 }
 0x184   : > { %v1236_v17 = vadd.f32 %v1235_v1, %v1234_v47  ;;  %v1165_v32 = vsel %vm1163_vm15, %v1164_v8, %v1162_v40  ;;  %vm1173_vm0 = vcmp.eq.f32.partialorder %v3540_v49, inf  ;;  %v1176_v12 = vand.u32 2147483648, %v3540_v49 }
 0x185   : > { %v1169_v34 = vmul.f32 0.5, %v1168_v22  ;;  %v1240_v62 = vrot.slane %v1239_v42, 4  ;;  %v1248_v41 = vadd.f32 %v1247_v31, %v1246_v54  ;;  %v1184_v58 = vmul.f32 %v1183_v24, %v3513_v2 }
 0x186   : > { %v1237_v20 = vrot.slane %v1236_v17, 1  ;;  %vm1175_vm1 = vcmp.eq.f32.partialorder %v3540_v49, 0.0  ;;  %v1214_v28 = vmul.f32 %v1165_v32, %v3391_v44  ;;  %vm1185_vm2 = vcmp.eq.f32.partialorder %v3513_v2, inf }
 0x187   : > { %v1170_v45 = vsub.f32 1.5, %v1169_v34  ;;  %v1241_v53 = vadd.f32 %v1240_v62, %v1239_v42  ;;  %v1249_v38 = vrot.slane %v1248_v41, 2  ;;  %v1186_v57 = vsel %vm1185_vm2, %v3513_v2, %v1184_v58 }
 0x188   : > { %v2494_v61 = vpop.eup %2493  ;;  %v1238_v52 = vadd.f32 %v1237_v20, %v1236_v17  ;;  %vm1284_vm3 = vcmask 1042434   ;;  %vm1187_vm4 = vcmp.eq.f32.partialorder %v3513_v2, 0.0  ;;  %vm1197_vm5 = vcmp.eq.f32.partialorder %v3573_v10, inf }
 0x189   : > { %v1171_v7 = vmul.f32 %v2492_v18, %v1170_v45  ;;  %v1191_v35 = vmul.f32 %v2494_v61, %v3573_v10  ;;  %1688 = vperm.xlu1 %2457, %v1677_v59   ;;  %v1254_v18 = vrot.slane %v1253_v46, 4  ;;  %v1242_v55 = vrot.slane %v1241_v53, 2 }
 0x18a   : > { %vm1199_vm6 = vcmp.eq.f32.partialorder %v3573_v10, 0.0  ;;  %v1200_v9 = vand.u32 2147483648, %v3573_v10  ;;  %v1250_v8 = vadd.f32 %v1249_v38, %v1248_v41  ;;  %vm1286_vm7 = vcmask 1043459  }
 0x18b   : > { %v1172_v60 = vmul.f32 %v1171_v7, %v3540_v49  ;;  %v1192_v6 = vmul.f32 %v2494_v61, %v1191_v35  ;;  %v1255_v54 = vadd.f32 %v1254_v18, %v1253_v46  ;;  %v1243_v30 = vadd.f32 %v1242_v55, %v1241_v53  ;;  %v1546_v34 = vpop.permute.xlu1 %1545 }
 0x18c   : > { %v1251_v17 = vrot.slane %v1250_v8, 1  ;;  %vm1288_vm8 = vcmask 1044484   ;;  %vm1290_vm9 = vcmask 1045509   ;;  %vm1292_vm10 = vcmask 1046534  }
 0x18d   : > { %v1193_v59 = vmul.f32 0.5, %v1192_v6  ;;  %v1174_v50 = vsel %vm1173_vm0, %v3540_v49, %v1172_v60  ;;  %v1188_v49 = vand.u32 2147483648, %v3513_v2  ;;  %v1256_v39 = vrot.slane %v1255_v54, 2  ;;  %v3632_v60 = vpop.permute.xlu2 %1591 }
 0x18e   : > { %v1177_v26 = vsel %vm1175_vm1, %v1176_v12, %v1174_v50  ;;  %v1244_v36 = vrot.slane %v1243_v30, 1  ;;  %v1252_v35 = vadd.f32 %v1251_v17, %v1250_v8  ;;  %vm1294_vm11 = vcmask 1047559  }
 0x18f   : > { %v1194_v29 = vsub.f32 1.5, %v1193_v59  ;;  %v1215_v33 = vmul.f32 %v1177_v26, %v3382_v21  ;;  %v1189_v16 = vsel %vm1187_vm4, %v1188_v49, %v1186_v57  ;;  %v1257_v42 = vadd.f32 %v1256_v39, %v1255_v54  ;;  %v3639_v59 = vpop.permute.xlu0 %1597 }
 0x190   : > { %v1216_v45 = vmul.f32 %v1189_v16, %v3391_v44 }
 0x191   : > { %v1195_v47 = vmul.f32 %v2494_v61, %v1194_v29  ;;  %1701 = vperm.xlu1 %2457, %v1690_v0   ;;  %v1260_v5 = vadd.f32 %v1215_v33, %v1214_v28  ;;  %v1285_v0 = vsel %vm1284_vm3, %v1238_v52, %v1283_v25  ;;  %v1245_v61 = vadd.f32 %v1244_v36, %v1243_v30  ;;  %v3646_v33 = vld [vmem:[#allocation15 + $0x8] sm:$0xff] }
 0x192   : > { %v1258_v25 = vrot.slane %v1257_v42, 1 }
 0x193   : > { %v1196_v22 = vmul.f32 %v1195_v47, %v3573_v10  ;;  %v1261_v1 = vrot.slane %v1260_v5, 4  ;;  %v1287_v62 = vsel %vm1286_vm7, %v1245_v61, %v1285_v0  ;;  %v1559_v44 = vpop.permute.xlu1 %1558 }
 0x194   : > { %v1289_v6 = vsel %vm1288_vm8, %v1252_v35, %v1287_v62 }
 0x195   : > { %v1198_v23 = vsel %vm1197_vm5, %v3573_v10, %v1196_v22  ;;  %v1262_v40 = vadd.f32 %v1261_v1, %v1260_v5  ;;  %v1631_v26 = vpop.permute.xlu2 %1630 }
 0x196   : > { %v1201_v2 = vsel %vm1199_vm6, %v1200_v9, %v1198_v23  ;;  %v1729_v49 = vmul.f32 %v1631_v26, %v3252_v14 }
 0x197   : > { %v1217_v46 = vmul.f32 %v1201_v2, %v3382_v21  ;;  %v1263_v31 = vrot.slane %v1262_v40, 2  ;;  %v1650_v37 = vpop.permute.xlu0 %1649 }
 0x198   : > { %v1732_v52 = vmul.f32 %v3646_v33, %v1650_v37  ;;  %v1745_v5 = vadd.f32 %v1729_v49, %v3299_v63 }
 0x199   : > { %2459 = vset.pattern.permute.xlu1 %v3088_v3  ;;  %v1267_v24 = vadd.f32 %v1217_v46, %v1216_v45  ;;  %v1264_v7 = vadd.f32 %v1263_v31, %v1262_v40  ;;  %v1259_v3 = vadd.f32 %v1258_v25, %v1257_v42 }
 0x19a   : > { %v1748_v54 = vadd.f32 %v1732_v52, %v1546_v34  ;;  %v3663_v39 = vand.u32 2147483647, %v1745_v5  ;;  %v3665_v34 = vld [vmem:[#allocation15] sm:$0xff] }
 0x19b   : > { %v1268_v10 = vrot.slane %v1267_v24, 4  ;;  %v1265_v32 = vrot.slane %v1264_v7, 1  ;;  %v1291_v20 = vsel %vm1290_vm9, %v1259_v3, %v1289_v6  ;;  %v1572_v55 = vpop.permute.xlu1 %1571 }
 0x19c   : > { %v3653_v30 = vand.u32 2147483647, %v1748_v54  ;;  %vm1784_vm1 = vcmp.eq.f32.partialorder %v3663_v39, inf  ;;  %vm1786_vm2 = vcmp.eq.f32.partialorder %v3663_v39, 0.0 }
 0x19d   : > { %v1269_v21 = vadd.f32 %v1268_v10, %v1267_v24  ;;  %v1266_v53 = vadd.f32 %v1265_v32, %v1264_v7 }
 0x19e   : > { %2495 = vrsqrt.f32 %v3653_v30  ;;  %vm1820_vm12 = vcmp.eq.f32.partialorder %v3653_v30, inf  ;;  %vm1822_vm15 = vcmp.eq.f32.partialorder %v3653_v30, 0.0 }
 0x19f   : > { %v1270_v12 = vrot.slane %v1269_v21, 2  ;;  %v1293_v18 = vsel %vm1292_vm10, %v1266_v53, %v1291_v20 }
 0x1a1   : > { %1721 = vperm.xlu1 %2459, %v1716_v19   ;;  %v1271_v41 = vadd.f32 %v1270_v12, %v1269_v21  ;;  %v1644_v19 = vpop.permute.xlu2 %1643 }
 0x1a2   : > { %v1731_v38 = vmul.f32 %v1644_v19, %v3252_v14  ;;  %v1737_v14 = vmul.f32 %v3665_v34, %v3358_v43 }
 0x1a3   : > { %v1272_v58 = vrot.slane %v1271_v41, 1  ;;  %v3644_v28 = vpop.permute.xlu1 %1584 }
 0x1a4   : > { %v1747_v47 = vadd.f32 %v1731_v38, %v3304_v4  ;;  %v2496_v4 = vpop.eup %2495  ;;  %v1753_v1 = vadd.f32 %v1737_v14, %v3329_v48 }
 0x1a5   : > { %v1273_v50 = vadd.f32 %v1272_v58, %v1271_v41  ;;  %v1814_v23 = vmul.f32 %v2496_v4, %v3653_v30  ;;  %v1715_v58 = vpop.permute.xlu0 %1714 }
 0x1a6   : > { %v3656_v22 = vand.u32 2147483647, %v1747_v47  ;;  %v3676_v61 = vand.u32 2147483647, %v1753_v1  ;;  %v1742_v52 = vmul.f32 %v3646_v33, %v1715_v58 }
 0x1a7   : > { %v3642_v29 = vsel %vm1294_vm11, %v1273_v50, %v1293_v18  ;;  %v1815_v2 = vmul.f32 %v2496_v4, %v1814_v23 }
 0x1a8   : > { %2497 = vrsqrt.f32 %v3656_v22  ;;  %vm1808_vm13 = vcmp.eq.f32.partialorder %v3656_v22, inf  ;;  %vm1810_vm0 = vcmp.eq.f32.partialorder %v3656_v22, 0.0 }
 0x1a9   : > { %v1663_v16 = vpop.permute.xlu2 %1662  ;;  %2499 = vrsqrt.f32 %v3663_v39  ;;  %v1816_v43 = vmul.f32 0.5, %v1815_v2  ;;  %v1811_v2 = vand.u32 2147483648, %v3656_v22 }
 0x1aa   : > { %v1734_v63 = vmul.f32 %v3646_v33, %v1663_v16  ;;  %2501 = vrsqrt.f32 %v3676_v61 }
 0x1ab   : > { %v1817_v10 = vsub.f32 1.5, %v1816_v43 }
 0x1ac   : > { %v1750_v40 = vadd.f32 %v1734_v63, %v1559_v44 }
 0x1ad   : > { %v1818_v3 = vmul.f32 %v2496_v4, %v1817_v10  ;;  %v1823_v4 = vand.u32 2147483648, %v3653_v30 }
 0x1ae   : > { %v2498_v0 = vpop.eup %2497  ;;  %v3680_v24 = vand.u32 2147483647, %v1750_v40 }
 0x1af   : > { %v1802_v36 = vmul.f32 %v2498_v0, %v3656_v22  ;;  %v2500_v45 = vpop.eup %2499 }
 0x1b0   : > { %v1778_v31 = vmul.f32 %v2500_v45, %v3663_v39  ;;  %2503 = vrsqrt.f32 %v3680_v24  ;;  %v3690_v12 = vpop.eup %2501  ;;  %vm1844_vm6 = vcmp.eq.f32.partialorder %v3680_v24, inf }
 0x1b1   : > { %v1676_v46 = vpop.permute.xlu2 %1675  ;;  %v1803_v42 = vmul.f32 %v2498_v0, %v1802_v36  ;;  %v1874_v50 = vmul.f32 %v3690_v12, %v3676_v61 }
 0x1b2   : > { %v1736_v17 = vmul.f32 %v3646_v33, %v1676_v46  ;;  %v1779_v32 = vmul.f32 %v2500_v45, %v1778_v31  ;;  %v3717_v46 = vld [vmem:[#allocation18 + $0x8] sm:$0xff] }
 0x1b3   : > { %v3651_v57 = vpop.permute.xlu1 %1604  ;;  %v1804_v25 = vmul.f32 0.5, %v1803_v42  ;;  %v1875_v47 = vmul.f32 %v3690_v12, %v1874_v50 }
 0x1b4   : > { %v1752_v35 = vadd.f32 %v1736_v17, %v1572_v55  ;;  %v1780_v20 = vmul.f32 0.5, %v1779_v32 }
 0x1b5   : > { %v1805_v44 = vsub.f32 1.5, %v1804_v25 }
 0x1b6   : > { %v3688_v53 = vand.u32 2147483647, %v1752_v35  ;;  %v3693_v18 = vpop.eup %2503  ;;  %v1781_v55 = vsub.f32 1.5, %v1780_v20  ;;  %v3729_v35 = vld [vmem:[#allocation18] sm:$0xff]  ;;  %v1787_v20 = vand.u32 2147483648, %v3663_v39 }
 0x1b7   : > { %v1806_v41 = vmul.f32 %v2498_v0, %v1805_v44  ;;  %v1838_v19 = vmul.f32 %v3693_v18, %v3680_v24 }
 0x1b8   : > { %v1782_v16 = vmul.f32 %v2500_v45, %v1781_v55 }
 0x1b9   : > { %v1696_v62 = vpop.permute.xlu2 %1695  ;;  %v1807_v37 = vmul.f32 %v1806_v41, %v3656_v22  ;;  %v1839_v23 = vmul.f32 %v3693_v18, %v1838_v19 }
 0x1ba   : > { %v1783_v17 = vmul.f32 %v1782_v16, %v3663_v39 }
 0x1bb   : > { %v1809_v14 = vsel %vm1808_vm13, %v3656_v22, %v1807_v37  ;;  %vm1868_vm13 = vcmp.eq.f32.partialorder %v3688_v53, inf }
 0x1bc   : > { %v1812_v31 = vsel %vm1810_vm0, %v1811_v2, %v1809_v14  ;;  %vm1880_vm0 = vcmp.eq.f32.partialorder %v3676_v61, inf }
 0x1c1   : > { %v1709_v26 = vpop.permute.xlu2 %1708 }
 0x1c2   : > { %v1741_v54 = vmul.f32 %v3665_v34, %v1709_v26 }
 0x1c3   : > { %v3661_v9 = vpop.permute.xlu1 %1610 }
 0x1c4   : > { %v1758_v63 = vadd.f32 %v1742_v52, %v3661_v9  ;;  %v1757_v45 = vadd.f32 %v1741_v54, %v3651_v57 }
 0x1c6   : > { %v3727_v10 = vand.u32 2147483647, %v1758_v63  ;;  %v3732_v22 = vand.u32 2147483647, %v1757_v45 }
 0x1cb   : > { %v3673_v8 = vpop.permute.xlu1 %1623 }
 0x1d3   : > { %v1637_v7 = vpop.permute.xlu1 %1636 }
 0x1d4   : > { %v1730_v48 = vmul.f32 %v3646_v33, %v1637_v7 }
 0x1d6   : > { %v1746_v21 = vadd.f32 %v1730_v48, %v3608_v56  ;;  %v1819_v56 = vmul.f32 %v1818_v3, %v3653_v30  ;;  %v1840_v48 = vmul.f32 0.5, %v1839_v23  ;;  %v1785_v3 = vsel %vm1784_vm1, %v3663_v39, %v1783_v17 }
 0x1d7   : > { %v1788_v37 = vsel %vm1786_vm2, %v1787_v20, %v1785_v3  ;;  %vm1870_vm2 = vcmp.eq.f32.partialorder %v3688_v53, 0.0 }
 0x1d8   : > { %v3686_v6 = vand.u32 2147483647, %v1746_v21  ;;  %v1821_v49 = vsel %vm1820_vm12, %v3653_v30, %v1819_v56  ;;  %v1876_v30 = vmul.f32 0.5, %v1875_v47  ;;  %v1971_v21 = vmul.f32 %v1812_v31, %v3729_v35 }
 0x1d9   : > { %v1824_v40 = vsel %vm1822_vm15, %v1823_v4, %v1821_v49  ;;  %v1841_v50 = vsub.f32 1.5, %v1840_v48  ;;  %v1969_v39 = vmul.f32 %v1788_v37, %v3729_v35  ;;  %vm1846_vm12 = vcmp.eq.f32.partialorder %v3680_v24, 0.0 }
 0x1da   : > { %2505 = vrsqrt.f32 %v3686_v6  ;;  %v1972_v7 = vmul.f32 %v1824_v40, %v3717_v46  ;;  %vm1796_vm4 = vcmp.eq.f32.partialorder %v3686_v6, inf  ;;  %vm1798_vm5 = vcmp.eq.f32.partialorder %v3686_v6, 0.0 }
 0x1db   : > { %2507 = vrsqrt.f32 %v3688_v53  ;;  %v1842_v49 = vmul.f32 %v3693_v18, %v1841_v50  ;;  %v1877_v14 = vsub.f32 1.5, %v1876_v30 }
 0x1dc   : > { %v1992_v58 = vadd.f32 %v1972_v7, %v1971_v21 }
 0x1dd   : > { %v1878_v45 = vmul.f32 %v3690_v12, %v1877_v14 }
 0x1de   : > { %v1993_v16 = vrot.slane %v1992_v58, 4 }
 0x1df   : > { %v3779_v12 = vmul.f32 %v1878_v45, %v3676_v61 }
 0x1e0   : > { %v2506_v38 = vpop.eup %2505  ;;  %v1994_v40 = vadd.f32 %v1993_v16, %v1992_v58 }
 0x1e1   : > { %v1790_v5 = vmul.f32 %v2506_v38, %v3686_v6  ;;  %v3711_v0 = vpop.eup %2507 }
 0x1e2   : > { %v1862_v9 = vmul.f32 %v3711_v0, %v3688_v53  ;;  %v1995_v7 = vrot.slane %v1994_v40, 2 }
 0x1e3   : > { %v1791_v36 = vmul.f32 %v2506_v38, %v1790_v5  ;;  %v1657_v1 = vpop.permute.xlu1 %1656 }
 0x1e4   : > { %v1733_v42 = vmul.f32 %v3665_v34, %v1657_v1  ;;  %v1863_v41 = vmul.f32 %v3711_v0, %v1862_v9  ;;  %v1843_v1 = vmul.f32 %v1842_v49, %v3680_v24 }
 0x1e5   : > { %v1792_v43 = vmul.f32 0.5, %v1791_v36 }
 0x1e6   : > { %v1749_v25 = vadd.f32 %v1733_v42, %v3312_v11  ;;  %v1739_v11 = vmul.f32 %v3665_v34, %v1696_v62  ;;  %v1799_v62 = vand.u32 2147483648, %v3686_v6  ;;  %v1845_v9 = vsel %vm1844_vm6, %v3680_v24, %v1843_v1 }
 0x1e7   : > { %v1793_v57 = vsub.f32 1.5, %v1792_v43  ;;  %vm1882_vm6 = vcmp.eq.f32.partialorder %v3676_v61, 0.0 }
 0x1e8   : > { %v3734_v32 = vand.u32 2147483647, %v1749_v25  ;;  %v1755_v19 = vadd.f32 %v1739_v11, %v3632_v60  ;;  %v1728_v11 = vpop.permute.xlu2 %1727 }
 0x1e9   : > { %v1794_v44 = vmul.f32 %v2506_v38, %v1793_v57  ;;  %v1864_v38 = vmul.f32 0.5, %v1863_v41  ;;  %v1847_v57 = vand.u32 2147483648, %v3680_v24  ;;  %v3792_v24 = vadd.f32 %v1995_v7, %v1994_v40 }
 0x1ea   : > { %2509 = vrsqrt.f32 %v3734_v32  ;;  %v3762_v63 = vand.u32 2147483647, %v1755_v19  ;;  %vm1832_vm15 = vcmp.eq.f32.partialorder %v3734_v32, inf  ;;  %v1835_v19 = vand.u32 2147483648, %v3734_v32 }
 0x1eb   : > { %2511 = vrsqrt.f32 %v3727_v10  ;;  %v1795_v56 = vmul.f32 %v1794_v44, %v3686_v6  ;;  %v1670_v26 = vpop.permute.xlu1 %1669  ;;  %v1848_v20 = vsel %vm1846_vm12, %v1847_v57, %v1845_v9  ;;  %vm1834_vm1 = vcmp.eq.f32.partialorder %v3734_v32, 0.0 }
 0x1ec   : > { %2513 = vrsqrt.f32 %v3732_v22  ;;  %v1735_v55 = vmul.f32 %v3665_v34, %v1670_v26  ;;  %v1974_v14 = vmul.f32 %v1848_v20, %v3717_v46  ;;  %vm1940_vm12 = vcmp.eq.f32.partialorder %v3727_v10, inf }
 0x1ed   : > { %v1797_v52 = vsel %vm1796_vm4, %v3686_v6, %v1795_v56  ;;  %v1744_v56 = vmul.f32 %v3646_v33, %v1728_v11 }
 0x1ee   : > { %v1800_v54 = vsel %vm1798_vm5, %v1799_v62, %v1797_v52  ;;  %v1751_v47 = vadd.f32 %v1735_v55, %v3318_v13  ;;  %v1865_v13 = vsub.f32 1.5, %v1864_v38 }
 0x1ef   : > { %v1970_v5 = vmul.f32 %v1800_v54, %v3717_v46 }
 0x1f0   : > { %v2510_v4 = vpop.eup %2509  ;;  %v3758_v23 = vand.u32 2147483647, %v1751_v47  ;;  %v1866_v17 = vmul.f32 %v3711_v0, %v1865_v13 }
 0x1f1   : > { %v3760_v60 = vpop.eup %2511  ;;  %v1826_v6 = vmul.f32 %v2510_v4, %v3734_v32  ;;  %v1985_v18 = vadd.f32 %v1970_v5, %v1969_v39  ;;  %v1760_v39 = vadd.f32 %v1744_v56, %v3673_v8 }
 0x1f2   : > { %v3765_v36 = vpop.eup %2513  ;;  %2515 = vrsqrt.f32 %v3758_v23  ;;  %v1934_v42 = vmul.f32 %v3760_v60, %v3727_v10  ;;  %v1867_v41 = vmul.f32 %v1866_v17, %v3688_v53  ;;  %vm1856_vm4 = vcmp.eq.f32.partialorder %v3758_v23, inf }
 0x1f3   : > { %v1827_v2 = vmul.f32 %v2510_v4, %v1826_v6  ;;  %2517 = vrsqrt.f32 %v3762_v63  ;;  %v1922_v30 = vmul.f32 %v3765_v36, %v3732_v22  ;;  %v1986_v31 = vrot.slane %v1985_v18, 4 }
 0x1f4   : > { %v1935_v21 = vmul.f32 %v3760_v60, %v1934_v42  ;;  %v3816_v17 = vand.u32 2147483647, %v1760_v39  ;;  %vm1858_vm5 = vcmp.eq.f32.partialorder %v3758_v23, 0.0 }
 0x1f5   : > { %v1828_v43 = vmul.f32 0.5, %v1827_v2  ;;  %v1923_v44 = vmul.f32 %v3765_v36, %v1922_v30  ;;  %v1987_v58 = vadd.f32 %v1986_v31, %v1985_v18  ;;  %v1869_v18 = vsel %vm1868_vm13, %v3688_v53, %v1867_v41 }
 0x1f6   : > { %v1936_v37 = vmul.f32 0.5, %v1935_v21  ;;  %v1871_v2 = vand.u32 2147483648, %v3688_v53  ;;  %v1997_v30 = vrot.slane %v3792_v24, 1  ;;  %v1859_v53 = vand.u32 2147483648, %v3758_v23 }
 0x1f7   : > { %v1829_v25 = vsub.f32 1.5, %v1828_v43  ;;  %v1924_v38 = vmul.f32 0.5, %v1923_v44  ;;  %vm1928_vm13 = vcmp.eq.f32.partialorder %v3732_v22, inf }
 0x1f8   : > { %v2516_v48 = vpop.eup %2515  ;;  %v1872_v43 = vsel %vm1870_vm2, %v1871_v2, %v1869_v18  ;;  %vm1906_vm2 = vcmp.eq.f32.partialorder %v3762_v63, 0.0 }
 0x1f9   : > { %v1830_v3 = vmul.f32 %v2510_v4, %v1829_v25  ;;  %v1850_v0 = vmul.f32 %v2516_v48, %v3758_v23  ;;  %v3788_v50 = vpop.eup %2517  ;;  %v1988_v4 = vrot.slane %v1987_v58, 2 }
 0x1fa   : > { %v1898_v49 = vmul.f32 %v3788_v50, %v3762_v63 }
 0x1fb   : > { %v1831_v26 = vmul.f32 %v1830_v3, %v3734_v32  ;;  %v1851_v62 = vmul.f32 %v2516_v48, %v1850_v0  ;;  %v1689_v55 = vpop.permute.xlu1 %1688  ;;  %v1989_v8 = vadd.f32 %v1988_v4, %v1987_v58  ;;  %v1883_v58 = vand.u32 2147483648, %v3676_v61 }
 0x1fc   : > { %v1738_v52 = vmul.f32 %v3646_v33, %v1689_v55  ;;  %v1899_v42 = vmul.f32 %v3788_v50, %v1898_v49 }
 0x1fd   : > { %v1833_v54 = vsel %vm1832_vm15, %v3734_v32, %v1831_v26  ;;  %v1852_v47 = vmul.f32 0.5, %v1851_v62  ;;  %v1937_v32 = vsub.f32 1.5, %v1936_v37  ;;  %v1990_v20 = vrot.slane %v1989_v8, 1 }
 0x1fe   : > { %v1836_v5 = vsel %vm1834_vm1, %v1835_v19, %v1833_v54  ;;  %v1754_v16 = vadd.f32 %v1738_v52, %v3644_v28  ;;  %v1925_v28 = vsub.f32 1.5, %v1924_v38  ;;  %v1900_v44 = vmul.f32 0.5, %v1899_v42 }
 0x1ff   : > { %v1973_v6 = vmul.f32 %v1836_v5, %v3729_v35  ;;  %v1853_v13 = vsub.f32 1.5, %v1852_v47  ;;  %v1938_v7 = vmul.f32 %v3760_v60, %v1937_v32  ;;  %v1976_v60 = vmul.f32 %v1872_v43, %v3717_v46 }
 0x200   : > { %v3810_v1 = vand.u32 2147483647, %v1754_v16  ;;  %v1926_v57 = vmul.f32 %v3765_v36, %v1925_v28  ;;  %v1901_v19 = vsub.f32 1.5, %v1900_v44  ;;  %v1991_v52 = vadd.f32 %v1990_v20, %v1989_v8 }
 0x201   : > { %v1854_v40 = vmul.f32 %v2516_v48, %v1853_v13  ;;  %v1999_v45 = vadd.f32 %v1974_v14, %v1973_v6  ;;  %v1998_v38 = vadd.f32 %v1997_v30, %v3792_v24  ;;  %vm1930_vm15 = vcmp.eq.f32.partialorder %v3732_v22, 0.0 }
 0x202   : > { %2519 = vrsqrt.f32 %v3810_v1  ;;  %v1927_v26 = vmul.f32 %v1926_v57, %v3732_v22  ;;  %v1943_v5 = vand.u32 2147483648, %v3727_v10  ;;  %v1902_v6 = vmul.f32 %v3788_v50, %v1901_v19 }
 0x203   : > { %v1855_v31 = vmul.f32 %v1854_v40, %v3758_v23  ;;  %v1702_v9 = vpop.permute.xlu1 %1701  ;;  %v2000_v25 = vrot.slane %v1999_v45, 4  ;;  %2521 = vrsqrt.f32 %v3816_v17  ;;  %v1931_v13 = vand.u32 2147483648, %v3732_v22 }
 0x204   : > { %v1740_v48 = vmul.f32 %v3646_v33, %v1702_v9  ;;  %v1929_v4 = vsel %vm1928_vm13, %v3732_v22, %v1927_v26  ;;  %v2049_v18 = vsel %vm1282_vm14, %v1998_v38, %v1991_v52  ;;  %vm1892_vm14 = vcmp.eq.f32.partialorder %v3810_v1, inf }
 0x205   : > { %v1857_v21 = vsel %vm1856_vm4, %v3758_v23, %v1855_v31  ;;  %v2001_v11 = vadd.f32 %v2000_v25, %v1999_v45  ;;  %v1881_v23 = vsel %vm1880_vm0, %v3676_v61, %v3779_v12  ;;  %vm1942_vm0 = vcmp.eq.f32.partialorder %v3727_v10, 0.0 }
 0x206   : > { %v1860_v3 = vsel %vm1858_vm5, %v1859_v53, %v1857_v21  ;;  %v1756_v0 = vadd.f32 %v1740_v48, %v3639_v59  ;;  %v1939_v59 = vmul.f32 %v1938_v7, %v3727_v10  ;;  %v1932_v8 = vsel %vm1930_vm15, %v1931_v13, %v1929_v4 }
 0x207   : > { %v1975_v33 = vmul.f32 %v1860_v3, %v3729_v35  ;;  %v2002_v41 = vrot.slane %v2001_v11, 2  ;;  %v1884_v31 = vsel %vm1882_vm6, %v1883_v58, %v1881_v23  ;;  %v1981_v48 = vmul.f32 %v1932_v8, %v3729_v35 }
 0x208   : > { %v2520_v36 = vpop.eup %2519  ;;  %v3837_v56 = vand.u32 2147483647, %v1756_v0  ;;  %v1941_v49 = vsel %vm1940_vm12, %v3727_v10, %v1939_v59  ;;  %v1903_v10 = vmul.f32 %v1902_v6, %v3762_v63  ;;  %v1895_v21 = vand.u32 2147483648, %v3810_v1 }
 0x209   : > { %v1886_v62 = vmul.f32 %v2520_v36, %v3810_v1  ;;  %v2003_v55 = vadd.f32 %v2002_v41, %v2001_v11  ;;  %v2006_v37 = vadd.f32 %v1976_v60, %v1975_v33  ;;  %v3848_v16 = vpop.eup %2521  ;;  %v1944_v2 = vsel %vm1942_vm0, %v1943_v5, %v1941_v49  ;;  %v614_v33 = vpop.f32.mrf.mxu0 }
 0x20a   : > { %2523 = vrsqrt.f32 %v3837_v56  ;;  %v1958_v42 = vmul.f32 %v3848_v16, %v3816_v17  ;;  %v1982_v9 = vmul.f32 %v1944_v2, %v3717_v46  ;;  %vm1904_vm1 = vcmp.eq.f32.partialorder %v3762_v63, inf }
 0x20b   : > { %v1887_v12 = vmul.f32 %v2520_v36, %v1886_v62  ;;  %v2004_v54 = vrot.slane %v2003_v55, 1  ;;  %v2007_v47 = vrot.slane %v2006_v37, 4  ;;  %v1919_v38 = vand.u32 2147483648, %v3837_v56 }
 0x20c   : > { %v1959_v22 = vmul.f32 %v3848_v16, %v1958_v42  ;;  %v2027_v60 = vadd.f32 %v1982_v9, %v1981_v48  ;;  %vm1918_vm4 = vcmp.eq.f32.partialorder %v3837_v56, 0.0  ;;  %vm1964_vm5 = vcmp.eq.f32.partialorder %v3816_v17, inf }
 0x20d   : > { %v1888_v14 = vmul.f32 0.5, %v1887_v12  ;;  %v2005_v39 = vadd.f32 %v2004_v54, %v2003_v55  ;;  %v2008_v24 = vadd.f32 %v2007_v47, %v2006_v37  ;;  %v645_v37 = vpop.f32.mrf.mxu1  ;;  %v696_v54 = vpop.f32.mrf.mxu3  ;;  %vm1966_vm6 = vcmp.eq.f32.partialorder %v3816_v17, 0.0 }
 0x20e   : > { %v1960_v59 = vmul.f32 0.5, %v1959_v22  ;;  %v2028_v55 = vrot.slane %v2027_v60, 4 }
 0x20f   : > { %v1889_v32 = vsub.f32 1.5, %v1888_v14  ;;  %v2009_v28 = vrot.slane %v2008_v24, 2  ;;  %v2050_v40 = vsel %vm1284_vm3, %v2005_v39, %v2049_v18  ;;  %vm1894_vm3 = vcmp.eq.f32.partialorder %v3810_v1, 0.0  ;;  %v671_v39 = vpop.f32.mrf.mxu2 }
 0x210   : > { %v2524_v45 = vpop.eup %2523  ;;  %v1961_v47 = vsub.f32 1.5, %v1960_v59  ;;  %v2029_v14 = vadd.f32 %v2028_v55, %v2027_v60 }
 0x211   : > { %v1890_v30 = vmul.f32 %v2520_v36, %v1889_v32  ;;  %v1910_v50 = vmul.f32 %v2524_v45, %v3837_v56  ;;  %v2010_v43 = vadd.f32 %v2009_v28, %v2008_v24  ;;  %v1977_v36 = vmul.f32 %v1884_v31, %v3729_v35  ;;  %v723_v18 = vpop.f32.mrf.mxu0 }
 0x212   : > { %v1962_v32 = vmul.f32 %v3848_v16, %v1961_v47 }
 0x213   : > { %v1891_v25 = vmul.f32 %v1890_v30, %v3810_v1  ;;  %v1911_v7 = vmul.f32 %v2524_v45, %v1910_v50  ;;  %v1722_v53 = vpop.permute.xlu1 %1721  ;;  %v2011_v57 = vrot.slane %v2010_v43, 1 }
 0x214   : > { %v1743_v11 = vmul.f32 %v3665_v34, %v1722_v53  ;;  %v1963_v50 = vmul.f32 %v1962_v32, %v3816_v17 }
 0x215   : > { %v1893_v61 = vsel %vm1892_vm14, %v3810_v1, %v1891_v25  ;;  %v1912_v44 = vmul.f32 0.5, %v1911_v7  ;;  %v2012_v3 = vadd.f32 %v2011_v57, %v2010_v43  ;;  %v1905_v1 = vsel %vm1904_vm1, %v3762_v63, %v1903_v10  ;;  %v746_v30 = vpop.f32.mrf.mxu1  ;;  %v1412_v25 = vpop.f32.mrf.mxu3 }
 0x216   : > { %v1759_v0 = vadd.f32 %v1743_v11, %v3346_v27  ;;  %v1896_v20 = vsel %vm1894_vm3, %v1895_v21, %v1893_v61  ;;  %v1907_v27 = vand.u32 2147483648, %v3762_v63  ;;  %v1965_v22 = vsel %vm1964_vm5, %v3816_v17, %v1963_v50 }
 0x217   : > { %v1913_v41 = vsub.f32 1.5, %v1912_v44  ;;  %v1978_v23 = vmul.f32 %v1896_v20, %v3717_v46  ;;  %v2051_v58 = vsel %vm1286_vm7, %v2012_v3, %v2050_v40  ;;  %vm1916_vm7 = vcmp.eq.f32.partialorder %v3837_v56, inf  ;;  %v1381_v48 = vpop.f32.mrf.mxu2 }
 0x218   : > { %v3878_v34 = vand.u32 2147483647, %v1759_v0  ;;  %v1908_v12 = vsel %vm1906_vm2, %v1907_v27, %v1905_v1  ;;  %v646_v11 = vadd.f32 %v645_v37, %v614_v33  ;;  %v1413_v61 = vadd.f32 %v1412_v25, %v1381_v48 }
 0x219   : > { %v1914_v26 = vmul.f32 %v2524_v45, %v1913_v41  ;;  %v2013_v62 = vadd.f32 %v1978_v23, %v1977_v36  ;;  %v1979_v63 = vmul.f32 %v1908_v12, %v3729_v35  ;;  %v2030_v45 = vrot.slane %v2029_v14, 2  ;;  %v1438_v0 = vpop.f32.mrf.mxu0 }
 0x21a   : > { %2525 = vrsqrt.f32 %v3878_v34  ;;  %v1967_v44 = vand.u32 2147483648, %v3816_v17  ;;  %v1955_v41 = vand.u32 2147483648, %v3878_v34  ;;  %vm1954_vm12 = vcmp.eq.f32.partialorder %v3878_v34, 0.0 }
 0x21b   : > { %v1915_v19 = vmul.f32 %v1914_v26, %v3837_v56  ;;  %v2014_v52 = vrot.slane %v2013_v62, 4  ;;  %v2031_v9 = vadd.f32 %v2030_v45, %v2029_v14  ;;  %v1439_v1 = vadd.f32 %v1438_v0, %v1413_v61 }
 0x21c   : > { %v1968_v36 = vsel %vm1966_vm6, %v1967_v44, %v1965_v22 }
 0x21d   : > { %v1917_v49 = vsel %vm1916_vm7, %v3837_v56, %v1915_v19  ;;  %v2015_v5 = vadd.f32 %v2014_v52, %v2013_v62  ;;  %v2032_v3 = vrot.slane %v2031_v9, 1  ;;  %v1463_v62 = vpop.f32.mrf.mxu1  ;;  %v1984_v17 = vmul.f32 %v1968_v36, %v3717_v46 }
 0x21e   : > { %v1920_v4 = vsel %vm1918_vm4, %v1919_v38, %v1917_v49  ;;  %v1464_v38 = vadd.f32 %v1463_v62, %v1439_v1 }
 0x21f   : > { %v1980_v24 = vmul.f32 %v1920_v4, %v3717_v46  ;;  %v2016_v6 = vrot.slane %v2015_v5, 2  ;;  %v2033_v26 = vadd.f32 %v2032_v3, %v2031_v9  ;;  %v1490_v12 = vpop.f32.mrf.mxu2  ;;  %v1513_v4 = vpop.f32.mrf.mxu3 }
 0x220   : > { %v2526_v13 = vpop.eup %2525 }
 0x221   : > { %v1946_v2 = vmul.f32 %v2526_v13, %v3878_v34  ;;  %v2017_v28 = vadd.f32 %v2016_v6, %v2015_v5  ;;  %v2020_v40 = vadd.f32 %v1980_v24, %v1979_v63  ;;  %v1491_v5 = vadd.f32 %v1490_v12, %v1464_v38 }
 0x223   : > { %v1947_v42 = vmul.f32 %v2526_v13, %v1946_v2  ;;  %v2018_v56 = vrot.slane %v2017_v28, 1  ;;  %v2021_v8 = vrot.slane %v2020_v40, 4  ;;  %v1514_v63 = vadd.f32 %v1513_v4, %v1491_v5 }
 0x225   : > { %v1948_v43 = vmul.f32 0.5, %v1947_v42  ;;  %v2019_v10 = vadd.f32 %v2018_v56, %v2017_v28  ;;  %v2022_v31 = vadd.f32 %v2021_v8, %v2020_v40  ;;  %v1516_v6 = vadd.f32 %v1514_v63, %v3326_v15 }
 0x227   : > { %v1949_v7 = vsub.f32 1.5, %v1948_v43  ;;  %v2023_v53 = vrot.slane %v2022_v31, 2  ;;  %v2052_v16 = vsel %vm1288_vm8, %v2019_v10, %v2051_v58  ;;  %vm1952_vm8 = vcmp.eq.f32.partialorder %v3878_v34, inf }
 0x228   : > { %v672_v58 = vadd.f32 %v671_v39, %v646_v11 }
 0x229   : > { %v1950_v57 = vmul.f32 %v2526_v13, %v1949_v7  ;;  %v2024_v21 = vadd.f32 %v2023_v53, %v2022_v31 }
 0x22a   : > { %v697_v52 = vadd.f32 %v696_v54, %v672_v58 }
 0x22b   : > { %v1951_v20 = vmul.f32 %v1950_v57, %v3878_v34  ;;  %v2025_v60 = vrot.slane %v2024_v21, 1 }
 0x22c   : > { %v724_v49 = vadd.f32 %v723_v18, %v697_v52 }
 0x22d   : > { %v1953_v23 = vsel %vm1952_vm8, %v3878_v34, %v1951_v20  ;;  %v2026_v33 = vadd.f32 %v2025_v60, %v2024_v21 }
 0x22e   : > { %v1956_v59 = vsel %vm1954_vm12, %v1955_v41, %v1953_v23 }
 0x22f   : > { %v1983_v27 = vmul.f32 %v1956_v59, %v3729_v35  ;;  %v2053_v55 = vsel %vm1290_vm9, %v2026_v33, %v2052_v16  ;;  %v747_v35 = vadd.f32 %v746_v30, %v724_v49 }
 0x230   : > { %v2054_v37 = vsel %vm1292_vm10, %v2033_v26, %v2053_v55 }
 0x231   : > { %v2034_v19 = vadd.f32 %v1984_v17, %v1983_v27  ;;  %v749_v24 = vadd.f32 %v747_v35, %v3282_v51 }
 0x233   : > { %v2035_v34 = vrot.slane %v2034_v19, 4  ;;  %v1297_v18 = vadd.f32 %v3642_v29, %v749_v24 }
 0x235   : > { %v2036_v47 = vadd.f32 %v2035_v34, %v2034_v19 }
 0x237   : > { %v2037_v14 = vrot.slane %v2036_v47, 2 }
 0x239   : > { %v2038_v39 = vadd.f32 %v2037_v14, %v2036_v47 }
 0x23b   : > { %v2039_v46 = vrot.slane %v2038_v39, 1 }
 0x23d   : > { %v2040_v54 = vadd.f32 %v2039_v46, %v2038_v39 }
 0x23f   : > { %v2055_v13 = vsel %vm1294_vm11, %v2040_v54, %v2054_v37 }
 0x240   : > { %v2057_v32 = vadd.f32 %v2055_v13, %v1516_v6 }
 0x242   : > { %v2058_v2 = vsub.f32 %v1297_v18, %v2057_v32 }
 0x244   : > { %2059 = vst [vmem:[%s510_s21] sm:$0xff] %v2058_v2 }
 0x245   : > { %2766 = shalt.err (!%p2763_p13)
}
 0x246   : > { %2331 = dma.vmem_to_hbm [thread:$0]  (%p3031_p0), %s2075_s24, 128, %s2077_s12, %s2061_s20  }
 0x247 PF: > { %s2088_s0 = sand.u32 1, %s2825_s30   ;;  %p2363_p2 = pnand %p2257_p5, %p3038_p6 }
 0x248   : > { %s2089_s28 = scalar_lea.sflag [#allocation4], %s2088_s0 }
 0x249   : > { %p2364_p4 = pneg %p2363_p2 }
 0x24b   : > { %2820 = dma.done.wait (%p2364_p4), %s2089_s28, 128  }
 0x24c   : > { %2822 = vsyncadd (%p2364_p4), %s2089_s28, 4294967168  ;;  %s31_s14 = sadd.s32 1, %s2845_s14   ;;  %s3984_s30 = smov %s2829_s10 }
 0x24d   : > { %p28_p7 = scmp.ge.s32.totalorder %s31_s14, 4   ;;  %s3985_s10 = smov %s2833_s11 }
 0x24e   : > { %s3986_s11 = smov %s3036_s15  ;;  %s3987_s12 = smov %s2841_s13 }
 0x24f   : > { %s3988_s13 = smov %s3990_s5  ;;  %30 = sbr.rel (!%p28_p7) target bundleno = 16 (0x10), region = 139 }
 0x254   :  { %2095 = vsyncpa [#allocation3], 1 }
 0x255   :  { %2097 = vsyncpa [#allocation3 + $0x1], 1 }
 0x256   :  { %2098 = vsyncpa [#allocation14], 1 }
 0x257   :  { %2099 = vsyncpa [#allocation17], 1 }
 0x258   :  { %2100 = vsyncpa [#allocation4], 1 }
 0x259   :  { %2102 = vsyncpa [#allocation4 + $0x1], 1 }
 0x25a   :  { %2103 = vsyncpa [#allocation5], 1 }
 0x25b   :  { %2105 = vsyncpa [#allocation5 + $0x1], 1 }
 0x25c   :  { %2106 = vsyncpa [#allocation8], 1 }
 0x25d   :  { %2107 = vsyncpa [#allocation6], 1 }
 0x25e   :  { %2109 = vsyncpa [#allocation6 + $0x1], 1 }
 0x25f   :  { %2110 = vsyncpa [#allocation11], 1 }

</bundles_post_ra>
